<compile_context>
chip_gen: v7x
topology: tpu7x:2x2x1
jax: 0.10.0
libtpu: 0.0.40
codegen_flags: <defaults>
</compile_context>

<pallas_src>
import jax
import jax.numpy as jnp
from jax import lax
from jax.experimental import pallas as pl
from jax.experimental.pallas import tpu as pltpu


def _round_up(x, m):
    return (x + m - 1) // m * m


def conv3d_bn_relu_avgpool(x, weight, gamma, beta, k_d, eps=1e-5):
    """Pallas implementation of Conv3dBNReLu_AvgPool.forward (training-mode BN).

    x:      (N, C, D, H, W) float32
    weight: (C, k_d, k_sp, k_sp) float32  (PyTorch (C,1,k_d,k_sp,k_sp) param, squeezed)
    gamma, beta: (C,) float32             (BatchNorm3d affine params)
    """
    N, C, D, H, W = x.shape
    k_sp = 2 * k_d - 1
    pd, ps = k_d // 2, k_sp // 2
    K = k_d * k_sp * k_sp

    # ---- glue: weight normalization + reflect padding (same as PyTorch forward) ----
    w = weight / weight.sum(axis=(1, 2, 3), keepdims=True)
    w_flat = w.reshape(C, K).astype(jnp.float32)            # SMEM scalar-prefetch operand

    xp = jnp.pad(x, ((0, 0), (0, 0), (pd, pd), (ps, ps), (ps, ps)), mode="reflect")
    Dp, Hp, Wp = xp.shape[2], xp.shape[3], xp.shape[4]
    Do, Ho, Wo = Dp - k_d + 1, Hp - k_sp + 1, Wp - k_sp + 1

    # Lane-dense flattened layout: (N, C, Dp, Hp*Wp) zero-padded on the last dim
    # to a multiple of 128.  The conv accumulates in "padded-row" coordinates
    # (row stride Wp); valid output columns are col < Ho*Wp and (col mod Wp) < Wo.
    P = Ho * Wp
    s_max = (k_sp - 1) * Wp + (k_sp - 1)          # largest in-plane tap offset
    Wflat = _round_up(max(Hp * Wp, P + s_max), 128)
    Pout = _round_up(P, 128)                      # lane-dense output slab width
    # TODO(synk): for large volumes, build the reflect halo in-kernel and tile D
    #             with a (k_d-1) halo via manual DMA instead of padding in HBM.
    xflat = xp.reshape(N, C, Dp, Hp * Wp).astype(jnp.float32)
    xflat = jnp.pad(xflat, ((0, 0), (0, 0), (0, 0), (0, Wflat - Hp * Wp)))

    # Valid-column mask, computed once (replaces per-step iota / int-div / where).
    col = jnp.arange(Wflat, dtype=jnp.int32)
    mask = ((col < P) & ((col % Wp) < Wo)).astype(jnp.float32).reshape(1, Wflat)

    # Per-channel pivot for shifted sum-of-squares (robust BN variance).
    pivot = jnp.mean(x, axis=(0, 2, 3, 4)).astype(jnp.float32)        # (C,)

    # ---- batch blocking: largest divisor Nb of N that fits the VMEM budget ----
    bytes_in = Dp * Wflat * 4
    bytes_out = Do * Pout * 4
    budget = 20 * 1024 * 1024        # double-buffered blocks must fit v7x's 64 MiB VMEM
    nb_cap = max(1, min(8, budget // (2 * (bytes_in + bytes_out))))
    Nb = 1
    for cand in range(1, N + 1):
        if N % cand == 0 and cand <= nb_cap:
            Nb = cand
    vmem_limit = 32 * 1024 * 1024    # explicit (v5e default scoped limit is 16 MiB)
    # TODO(synk): on v5e/v6e (128 MiB VMEM) a larger budget / Nb and bf16 inputs
    #             would further cut HBM read traffic.

    def _conv_block(xw, w_sref, c):
        """Depthwise k_d*k_sp^2-tap conv on one (n, c) slab.

        xw: (Dp, Wflat) f32 value.  Returns a (Do, Wflat) accumulation in
        padded-row coordinates; columns >= P or with (col mod Wp) >= Wo hold
        halo garbage (masked / discarded by the caller).
        """
        acc = jnp.zeros((Do, Wflat), jnp.float32)
        for kd in range(k_d):
            xk = xw[kd:kd + Do, :]                # one sublane-shifted slab per kd
            for kh in range(k_sp):
                for kw in range(k_sp):
                    tap = (kd * k_sp + kh) * k_sp + kw
                    s = kh * Wp + kw
                    # single XLU lane-rotate per tap; accumulator is vreg-aligned
                    xs = xk if s == 0 else pltpu.roll(xk, shift=Wflat - s, axis=1)
                    acc = acc + w_sref[c, tap] * xs
        return acc

    # -------- kernel 1: BN batch statistics (per-channel shifted sum / sumsq) --------
    def stats_kernel(w_sref, pivot_sref, mask_ref, x_ref, stats_ref):
        c = pl.program_id(0)
        nblk = pl.program_id(1)

        @pl.when(nblk == 0)
        def _():
            stats_ref[...] = jnp.zeros_like(stats_ref)

        m = mask_ref[...]                         # (1, Wflat), precomputed in wrapper
        piv = pivot_sref[c]
        ssum = jnp.float32(0.0)
        ssq = jnp.float32(0.0)
        for nb in range(Nb):                      # unrolled batch sub-loop
            acc = _conv_block(x_ref[nb], w_sref, c)
            av = (acc - piv) * m                  # shift by pivot, zero halo columns
            ssum = ssum + jnp.sum(av)
            ssq = ssq + jnp.sum(av * av)
        row = lax.broadcasted_iota(jnp.int32, (2, 128), 0)
        stats_ref[...] += jnp.where(row == 0, ssum, ssq)

    stats = pl.pallas_call(
        stats_kernel,
        out_shape=jax.ShapeDtypeStruct((C, 2, 128), jnp.float32),
        grid_spec=pltpu.PrefetchScalarGridSpec(
            num_scalar_prefetch=2,
            grid=(C, N // Nb),
            in_specs=[
                pl.BlockSpec((1, Wflat), lambda c, nb, w_s, p_s: (0, 0)),
                pl.BlockSpec((Nb, None, Dp, Wflat),
                             lambda c, nb, w_s, p_s: (nb, c, 0, 0)),
            ],
            out_specs=pl.BlockSpec((None, 2, 128), lambda c, nb, w_s, p_s: (c, 0, 0)),
        ),
        compiler_params=pltpu.CompilerParams(
            dimension_semantics=("parallel", "arbitrary"),
            vmem_limit_bytes=vmem_limit,
        ),
    )(w_flat, pivot, mask, xflat)

    # ---- glue: shifted batch stats -> per-channel scale/shift (training-mode BN) ----
    count = jnp.float32(N * Do * Ho * Wo)
    dsum = stats[:, 0, 0] / count
    dsq = stats[:, 1, 0] / count
    mean = pivot + dsum
    var = dsq - dsum * dsum                       # biased variance (shifted => robust)
    inv = gamma.astype(jnp.float32) * lax.rsqrt(var + eps)
    scale = inv
    shift = beta.astype(jnp.float32) - mean * inv
    sb = jnp.stack([scale, shift], axis=1)        # (C, 2) SMEM scalar-prefetch operand

    # -------- kernel 2: fused depthwise conv (recompute) + BN affine + ReLU --------
    def fused_kernel(w_sref, sb_sref, x_ref, o_ref):
        c = pl.program_id(0)
        sc = sb_sref[c, 0]
        sh = sb_sref[c, 1]
        for nb in range(Nb):
            acc = _conv_block(x_ref[nb], w_sref, c)
            # lane-dense, unmasked store of the padded slab; compaction in wrapper
            o_ref[nb] = jnp.maximum(acc[:, :Pout] * sc + sh, 0.0)

    out_flat = pl.pallas_call(
        fused_kernel,
        out_shape=jax.ShapeDtypeStruct((N, C, Do, Pout), jnp.float32),
        grid_spec=pltpu.PrefetchScalarGridSpec(
            num_scalar_prefetch=2,
            grid=(C, N // Nb),
            in_specs=[
                pl.BlockSpec((Nb, None, Dp, Wflat),
                             lambda c, nb, w_s, sb_s: (nb, c, 0, 0)),
            ],
            out_specs=pl.BlockSpec((Nb, None, Do, Pout),
                                   lambda c, nb, w_s, sb_s: (nb, c, 0, 0)),
        ),
        compiler_params=pltpu.CompilerParams(
            dimension_semantics=("parallel", "parallel"),
            vmem_limit_bytes=vmem_limit,
        ),
    )(w_flat, sb, xflat)

    # wrapper-side compaction: padded-row columns -> dense (Ho, Wo)
    out = out_flat[..., :P].reshape(N, C, Do, Ho, Wp)[..., :Wo]
    return out


def reference(x, weight, gamma, beta, k_d, eps=1e-5):
    """Pure-JAX reference matching the PyTorch forward (training-mode BN)."""
    N, C, D, H, W = x.shape
    k_sp = 2 * k_d - 1
    pd, ps = k_d // 2, k_sp // 2
    w = weight / weight.sum(axis=(1, 2, 3), keepdims=True)
    xp = jnp.pad(x, ((0, 0), (0, 0), (pd, pd), (ps, ps), (ps, ps)), mode="reflect")
    wk = w[:, None]  # (C, 1, k_d, k_sp, k_sp)
    y = lax.conv_general_dilated(
        xp, wk, window_strides=(1, 1, 1), padding="VALID",
        dimension_numbers=("NCDHW", "OIDHW", "NCDHW"), feature_group_count=C)
    mean = y.mean(axis=(0, 2, 3, 4), keepdims=True)
    var = ((y - mean) ** 2).mean(axis=(0, 2, 3, 4), keepdims=True)
    yn = (y - mean) / jnp.sqrt(var + eps)
    yn = yn * gamma.reshape(1, C, 1, 1, 1) + beta.reshape(1, C, 1, 1, 1)
    return jnp.maximum(yn, 0.0)


if __name__ == "__main__":
    key = jax.random.PRNGKey(0)
    N, C, D, H, W = 2, 4, 8, 16, 16
    k_d = 2
    k_sp = 2 * k_d - 1

    x = jax.random.normal(key, (N, C, D, H, W), dtype=jnp.float32)
    # deterministic parameter init exactly as in the module's __init__
    weight = jnp.full((C, k_d, k_sp, k_sp), 1.0 / (k_d * k_sp * k_sp), dtype=jnp.float32)
    gamma = jnp.ones((C,), jnp.float32)   # BatchNorm3d weight init
    beta = jnp.zeros((C,), jnp.float32)   # BatchNorm3d bias init

    out = conv3d_bn_relu_avgpool(x, weight, gamma, beta, k_d)
    out = jax.block_until_ready(out)

    ref = reference(x, weight, gamma, beta, k_d)
    assert out.shape == ref.shape, (out.shape, ref.shape)
    max_err = float(jnp.max(jnp.abs(out - ref)))
    assert max_err < 1e-4, f"max abs error {max_err}"
    print("KERNEL_OK")
</pallas_src>

<mosaic_0001>
module attributes {stable_mosaic.version = 11 : i64} {
  func.func @stats_kernel(%arg0: i32, %arg1: i32, %arg2: memref<4x18xf32, #tpu.memory_space<smem>>, %arg3: memref<4xf32, #tpu.memory_space<smem>>, %arg4: memref<1x384xf32, #tpu.memory_space<vmem>>, %arg5: memref<2x1x10x384xf32, #tpu.memory_space<vmem>>, %arg6: memref<1x2x128xf32, #tpu.memory_space<vmem>>) attributes {dimension_semantics = [#tpu.dimension_semantics<parallel>, #tpu.dimension_semantics<arbitrary>], iteration_bounds = array<i64: 4, 1>, scalar_prefetch = 2 : i64, scratch_operands = 0 : i64, tpu.core_type = #tpu.core_type<tc>, window_params = [{pipeline_mode = #tpu.pipeline_mode<synchronous>, transform_indices = @transform_0, window_bounds = array<i64: 1, 384>}, {transform_indices = @transform_1, window_bounds = array<i64: 2, 1, 10, 384>}, {transform_indices = @transform_2, window_bounds = array<i64: 1, 2, 128>}]} {
    %c0_i32 = arith.constant 0 : i32
    %0 = arith.cmpi eq, %arg1, %c0_i32 : i32
    %1 = arith.extui %0 : i1 to i32
    %c0_i32_0 = arith.constant 0 : i32
    %2 = arith.cmpi ne, %1, %c0_i32_0 : i32
    scf.if %2 {
      %cst_67 = arith.constant 0.000000e+00 : f32
      %270 = vector.broadcast %cst_67 : f32 to vector<2x128xf32>
      %c0_68 = arith.constant 0 : index
      %c0_69 = arith.constant 0 : index
      %c0_70 = arith.constant 0 : index
      %271 = vector.load %arg6[%c0_68, %c0_69, %c0_70] : memref<1x2x128xf32, #tpu.memory_space<vmem>>, vector<1x2x128xf32>
      %272 = vector.shape_cast %271 : vector<1x2x128xf32> to vector<2x128xf32>
      %273 = vector.shape_cast %270 : vector<2x128xf32> to vector<1x2x128xf32>
      tpu.vector_store %arg6[%c0_68, %c0_69, %c0_70], %273 {strides = array<i32>} : memref<1x2x128xf32, #tpu.memory_space<vmem>>, vector<1x2x128xf32>,
    } else {
    }
    %c0 = arith.constant 0 : index
    %c0_1 = arith.constant 0 : index
    %3 = vector.load %arg4[%c0, %c0_1] : memref<1x384xf32, #tpu.memory_space<vmem>>, vector<1x384xf32>
    %4 = arith.index_cast %arg0 : i32 to index
    %5 = memref.load %arg3[%4] : memref<4xf32, #tpu.memory_space<smem>>
    %c0_2 = arith.constant 0 : index
    %c0_3 = arith.constant 0 : index
    %c0_4 = arith.constant 0 : index
    %c0_5 = arith.constant 0 : index
    %6 = vector.load %arg5[%c0_2, %c0_3, %c0_4, %c0_5] : memref<2x1x10x384xf32, #tpu.memory_space<vmem>>, vector<1x1x10x384xf32>
    %7 = vector.shape_cast %6 : vector<1x1x10x384xf32> to vector<10x384xf32>
    %cst = arith.constant 0.000000e+00 : f32
    %8 = vector.broadcast %cst : f32 to vector<9x384xf32>
    %9 = vector.extract_strided_slice %7 {offsets = [0, 0], sizes = [9, 384], strides = [1, 1]} : vector<10x384xf32> to vector<9x384xf32>
    %10 = arith.index_cast %arg0 : i32 to index
    %c0_6 = arith.constant 0 : index
    %11 = memref.load %arg2[%10, %c0_6] : memref<4x18xf32, #tpu.memory_space<smem>>
    %12 = vector.broadcast %11 : f32 to vector<9x384xf32>
    %13 = arith.mulf %12, %9 : vector<9x384xf32>
    %14 = arith.addf %8, %13 : vector<9x384xf32>
    %c383_i32 = arith.constant 383 : i32
    %15 = tpu.dynamic_rotate %9 by %c383_i32 dim 1 : vector<9x384xf32>, i32 -> vector<9x384xf32>
    %16 = arith.index_cast %arg0 : i32 to index
    %c1 = arith.constant 1 : index
    %17 = memref.load %arg2[%16, %c1] : memref<4x18xf32, #tpu.memory_space<smem>>
    %18 = vector.broadcast %17 : f32 to vector<9x384xf32>
    %19 = arith.mulf %18, %15 : vector<9x384xf32>
    %20 = arith.addf %14, %19 : vector<9x384xf32>
    %c382_i32 = arith.constant 382 : i32
    %21 = tpu.dynamic_rotate %9 by %c382_i32 dim 1 : vector<9x384xf32>, i32 -> vector<9x384xf32>
    %22 = arith.index_cast %arg0 : i32 to index
    %c2 = arith.constant 2 : index
    %23 = memref.load %arg2[%22, %c2] : memref<4x18xf32, #tpu.memory_space<smem>>
    %24 = vector.broadcast %23 : f32 to vector<9x384xf32>
    %25 = arith.mulf %24, %21 : vector<9x384xf32>
    %26 = arith.addf %20, %25 : vector<9x384xf32>
    %c366_i32 = arith.constant 366 : i32
    %27 = tpu.dynamic_rotate %9 by %c366_i32 dim 1 : vector<9x384xf32>, i32 -> vector<9x384xf32>
    %28 = arith.index_cast %arg0 : i32 to index
    %c3 = arith.constant 3 : index
    %29 = memref.load %arg2[%28, %c3] : memref<4x18xf32, #tpu.memory_space<smem>>
    %30 = vector.broadcast %29 : f32 to vector<9x384xf32>
    %31 = arith.mulf %30, %27 : vector<9x384xf32>
    %32 = arith.addf %26, %31 : vector<9x384xf32>
    %c365_i32 = arith.constant 365 : i32
    %33 = tpu.dynamic_rotate %9 by %c365_i32 dim 1 : vector<9x384xf32>, i32 -> vector<9x384xf32>
    %34 = arith.index_cast %arg0 : i32 to index
    %c4 = arith.constant 4 : index
    %35 = memref.load %arg2[%34, %c4] : memref<4x18xf32, #tpu.memory_space<smem>>
    %36 = vector.broadcast %35 : f32 to vector<9x384xf32>
    %37 = arith.mulf %36, %33 : vector<9x384xf32>
    %38 = arith.addf %32, %37 : vector<9x384xf32>
    %c364_i32 = arith.constant 364 : i32
    %39 = tpu.dynamic_rotate %9 by %c364_i32 dim 1 : vector<9x384xf32>, i32 -> vector<9x384xf32>
    %40 = arith.index_cast %arg0 : i32 to index
    %c5 = arith.constant 5 : index
    %41 = memref.load %arg2[%40, %c5] : memref<4x18xf32, #tpu.memory_space<smem>>
    %42 = vector.broadcast %41 : f32 to vector<9x384xf32>
    %43 = arith.mulf %42, %39 : vector<9x384xf32>
    %44 = arith.addf %38, %43 : vector<9x384xf32>
    %c348_i32 = arith.constant 348 : i32
    %45 = tpu.dynamic_rotate %9 by %c348_i32 dim 1 : vector<9x384xf32>, i32 -> vector<9x384xf32>
    %46 = arith.index_cast %arg0 : i32 to index
    %c6 = arith.constant 6 : index
    %47 = memref.load %arg2[%46, %c6] : memref<4x18xf32, #tpu.memory_space<smem>>
    %48 = vector.broadcast %47 : f32 to vector<9x384xf32>
    %49 = arith.mulf %48, %45 : vector<9x384xf32>
    %50 = arith.addf %44, %49 : vector<9x384xf32>
    %c347_i32 = arith.constant 347 : i32
    %51 = tpu.dynamic_rotate %9 by %c347_i32 dim 1 : vector<9x384xf32>, i32 -> vector<9x384xf32>
    %52 = arith.index_cast %arg0 : i32 to index
    %c7 = arith.constant 7 : index
    %53 = memref.load %arg2[%52, %c7] : memref<4x18xf32, #tpu.memory_space<smem>>
    %54 = vector.broadcast %53 : f32 to vector<9x384xf32>
    %55 = arith.mulf %54, %51 : vector<9x384xf32>
    %56 = arith.addf %50, %55 : vector<9x384xf32>
    %c346_i32 = arith.constant 346 : i32
    %57 = tpu.dynamic_rotate %9 by %c346_i32 dim 1 : vector<9x384xf32>, i32 -> vector<9x384xf32>
    %58 = arith.index_cast %arg0 : i32 to index
    %c8 = arith.constant 8 : index
    %59 = memref.load %arg2[%58, %c8] : memref<4x18xf32, #tpu.memory_space<smem>>
    %60 = vector.broadcast %59 : f32 to vector<9x384xf32>
    %61 = arith.mulf %60, %57 : vector<9x384xf32>
    %62 = arith.addf %56, %61 : vector<9x384xf32>
    %63 = vector.extract_strided_slice %7 {offsets = [1, 0], sizes = [9, 384], strides = [1, 1]} : vector<10x384xf32> to vector<9x384xf32>
    %64 = arith.index_cast %arg0 : i32 to index
    %c9 = arith.constant 9 : index
    %65 = memref.load %arg2[%64, %c9] : memref<4x18xf32, #tpu.memory_space<smem>>
    %66 = vector.broadcast %65 : f32 to vector<9x384xf32>
    %67 = arith.mulf %66, %63 : vector<9x384xf32>
    %68 = arith.addf %62, %67 : vector<9x384xf32>
    %c383_i32_7 = arith.constant 383 : i32
    %69 = tpu.dynamic_rotate %63 by %c383_i32_7 dim 1 : vector<9x384xf32>, i32 -> vector<9x384xf32>
    %70 = arith.index_cast %arg0 : i32 to index
    %c10 = arith.constant 10 : index
    %71 = memref.load %arg2[%70, %c10] : memref<4x18xf32, #tpu.memory_space<smem>>
    %72 = vector.broadcast %71 : f32 to vector<9x384xf32>
    %73 = arith.mulf %72, %69 : vector<9x384xf32>
    %74 = arith.addf %68, %73 : vector<9x384xf32>
    %c382_i32_8 = arith.constant 382 : i32
    %75 = tpu.dynamic_rotate %63 by %c382_i32_8 dim 1 : vector<9x384xf32>, i32 -> vector<9x384xf32>
    %76 = arith.index_cast %arg0 : i32 to index
    %c11 = arith.constant 11 : index
    %77 = memref.load %arg2[%76, %c11] : memref<4x18xf32, #tpu.memory_space<smem>>
    %78 = vector.broadcast %77 : f32 to vector<9x384xf32>
    %79 = arith.mulf %78, %75 : vector<9x384xf32>
    %80 = arith.addf %74, %79 : vector<9x384xf32>
    %c366_i32_9 = arith.constant 366 : i32
    %81 = tpu.dynamic_rotate %63 by %c366_i32_9 dim 1 : vector<9x384xf32>, i32 -> vector<9x384xf32>
    %82 = arith.index_cast %arg0 : i32 to index
    %c12 = arith.constant 12 : index
    %83 = memref.load %arg2[%82, %c12] : memref<4x18xf32, #tpu.memory_space<smem>>
    %84 = vector.broadcast %83 : f32 to vector<9x384xf32>
    %85 = arith.mulf %84, %81 : vector<9x384xf32>
    %86 = arith.addf %80, %85 : vector<9x384xf32>
    %c365_i32_10 = arith.constant 365 : i32
    %87 = tpu.dynamic_rotate %63 by %c365_i32_10 dim 1 : vector<9x384xf32>, i32 -> vector<9x384xf32>
    %88 = arith.index_cast %arg0 : i32 to index
    %c13 = arith.constant 13 : index
    %89 = memref.load %arg2[%88, %c13] : memref<4x18xf32, #tpu.memory_space<smem>>
    %90 = vector.broadcast %89 : f32 to vector<9x384xf32>
    %91 = arith.mulf %90, %87 : vector<9x384xf32>
    %92 = arith.addf %86, %91 : vector<9x384xf32>
    %c364_i32_11 = arith.constant 364 : i32
    %93 = tpu.dynamic_rotate %63 by %c364_i32_11 dim 1 : vector<9x384xf32>, i32 -> vector<9x384xf32>
    %94 = arith.index_cast %arg0 : i32 to index
    %c14 = arith.constant 14 : index
    %95 = memref.load %arg2[%94, %c14] : memref<4x18xf32, #tpu.memory_space<smem>>
    %96 = vector.broadcast %95 : f32 to vector<9x384xf32>
    %97 = arith.mulf %96, %93 : vector<9x384xf32>
    %98 = arith.addf %92, %97 : vector<9x384xf32>
    %c348_i32_12 = arith.constant 348 : i32
    %99 = tpu.dynamic_rotate %63 by %c348_i32_12 dim 1 : vector<9x384xf32>, i32 -> vector<9x384xf32>
    %100 = arith.index_cast %arg0 : i32 to index
    %c15 = arith.constant 15 : index
    %101 = memref.load %arg2[%100, %c15] : memref<4x18xf32, #tpu.memory_space<smem>>
    %102 = vector.broadcast %101 : f32 to vector<9x384xf32>
    %103 = arith.mulf %102, %99 : vector<9x384xf32>
    %104 = arith.addf %98, %103 : vector<9x384xf32>
    %c347_i32_13 = arith.constant 347 : i32
    %105 = tpu.dynamic_rotate %63 by %c347_i32_13 dim 1 : vector<9x384xf32>, i32 -> vector<9x384xf32>
    %106 = arith.index_cast %arg0 : i32 to index
    %c16 = arith.constant 16 : index
    %107 = memref.load %arg2[%106, %c16] : memref<4x18xf32, #tpu.memory_space<smem>>
    %108 = vector.broadcast %107 : f32 to vector<9x384xf32>
    %109 = arith.mulf %108, %105 : vector<9x384xf32>
    %110 = arith.addf %104, %109 : vector<9x384xf32>
    %c346_i32_14 = arith.constant 346 : i32
    %111 = tpu.dynamic_rotate %63 by %c346_i32_14 dim 1 : vector<9x384xf32>, i32 -> vector<9x384xf32>
    %112 = arith.index_cast %arg0 : i32 to index
    %c17 = arith.constant 17 : index
    %113 = memref.load %arg2[%112, %c17] : memref<4x18xf32, #tpu.memory_space<smem>>
    %114 = vector.broadcast %113 : f32 to vector<9x384xf32>
    %115 = arith.mulf %114, %111 : vector<9x384xf32>
    %116 = arith.addf %110, %115 : vector<9x384xf32>
    %117 = vector.broadcast %5 : f32 to vector<9x384xf32>
    %118 = arith.subf %116, %117 : vector<9x384xf32>
    %119 = vector.broadcast %3 : vector<1x384xf32> to vector<9x384xf32>
    %120 = arith.mulf %118, %119 : vector<9x384xf32>
    %121 = vector.shape_cast %120 : vector<9x384xf32> to vector<1x9x384xf32>
    %cst_15 = arith.constant dense<0.000000e+00> : vector<1xf32>
    %122 = vector.multi_reduction <add>, %121, %cst_15 [1, 2] : vector<1x9x384xf32> to vector<1xf32>
    %123 = vector.shape_cast %122 : vector<1xf32> to vector<1x1x1xf32>
    %124 = vector.extract %123[0, 0, 0] : f32 from vector<1x1x1xf32>
    %cst_16 = arith.constant 0.000000e+00 : f32
    %125 = arith.addf %cst_16, %124 : f32
    %126 = arith.mulf %120, %120 : vector<9x384xf32>
    %127 = vector.shape_cast %126 : vector<9x384xf32> to vector<1x9x384xf32>
    %cst_17 = arith.constant dense<0.000000e+00> : vector<1xf32>
    %128 = vector.multi_reduction <add>, %127, %cst_17 [1, 2] : vector<1x9x384xf32> to vector<1xf32>
    %129 = vector.shape_cast %128 : vector<1xf32> to vector<1x1x1xf32>
    %130 = vector.extract %129[0, 0, 0] : f32 from vector<1x1x1xf32>
    %cst_18 = arith.constant 0.000000e+00 : f32
    %131 = arith.addf %cst_18, %130 : f32
    %c1_19 = arith.constant 1 : index
    %c0_20 = arith.constant 0 : index
    %c0_21 = arith.constant 0 : index
    %c0_22 = arith.constant 0 : index
    %132 = vector.load %arg5[%c1_19, %c0_20, %c0_21, %c0_22] : memref<2x1x10x384xf32, #tpu.memory_space<vmem>>, vector<1x1x10x384xf32>
    %133 = vector.shape_cast %132 : vector<1x1x10x384xf32> to vector<10x384xf32>
    %cst_23 = arith.constant 0.000000e+00 : f32
    %134 = vector.broadcast %cst_23 : f32 to vector<9x384xf32>
    %135 = vector.extract_strided_slice %133 {offsets = [0, 0], sizes = [9, 384], strides = [1, 1]} : vector<10x384xf32> to vector<9x384xf32>
    %136 = arith.index_cast %arg0 : i32 to index
    %c0_24 = arith.constant 0 : index
    %137 = memref.load %arg2[%136, %c0_24] : memref<4x18xf32, #tpu.memory_space<smem>>
    %138 = vector.broadcast %137 : f32 to vector<9x384xf32>
    %139 = arith.mulf %138, %135 : vector<9x384xf32>
    %140 = arith.addf %134, %139 : vector<9x384xf32>
    %c383_i32_25 = arith.constant 383 : i32
    %141 = tpu.dynamic_rotate %135 by %c383_i32_25 dim 1 : vector<9x384xf32>, i32 -> vector<9x384xf32>
    %142 = arith.index_cast %arg0 : i32 to index
    %c1_26 = arith.constant 1 : index
    %143 = memref.load %arg2[%142, %c1_26] : memref<4x18xf32, #tpu.memory_space<smem>>
    %144 = vector.broadcast %143 : f32 to vector<9x384xf32>
    %145 = arith.mulf %144, %141 : vector<9x384xf32>
    %146 = arith.addf %140, %145 : vector<9x384xf32>
    %c382_i32_27 = arith.constant 382 : i32
    %147 = tpu.dynamic_rotate %135 by %c382_i32_27 dim 1 : vector<9x384xf32>, i32 -> vector<9x384xf32>
    %148 = arith.index_cast %arg0 : i32 to index
    %c2_28 = arith.constant 2 : index
    %149 = memref.load %arg2[%148, %c2_28] : memref<4x18xf32, #tpu.memory_space<smem>>
    %150 = vector.broadcast %149 : f32 to vector<9x384xf32>
    %151 = arith.mulf %150, %147 : vector<9x384xf32>
    %152 = arith.addf %146, %151 : vector<9x384xf32>
    %c366_i32_29 = arith.constant 366 : i32
    %153 = tpu.dynamic_rotate %135 by %c366_i32_29 dim 1 : vector<9x384xf32>, i32 -> vector<9x384xf32>
    %154 = arith.index_cast %arg0 : i32 to index
    %c3_30 = arith.constant 3 : index
    %155 = memref.load %arg2[%154, %c3_30] : memref<4x18xf32, #tpu.memory_space<smem>>
    %156 = vector.broadcast %155 : f32 to vector<9x384xf32>
    %157 = arith.mulf %156, %153 : vector<9x384xf32>
    %158 = arith.addf %152, %157 : vector<9x384xf32>
    %c365_i32_31 = arith.constant 365 : i32
    %159 = tpu.dynamic_rotate %135 by %c365_i32_31 dim 1 : vector<9x384xf32>, i32 -> vector<9x384xf32>
    %160 = arith.index_cast %arg0 : i32 to index
    %c4_32 = arith.constant 4 : index
    %161 = memref.load %arg2[%160, %c4_32] : memref<4x18xf32, #tpu.memory_space<smem>>
    %162 = vector.broadcast %161 : f32 to vector<9x384xf32>
    %163 = arith.mulf %162, %159 : vector<9x384xf32>
    %164 = arith.addf %158, %163 : vector<9x384xf32>
    %c364_i32_33 = arith.constant 364 : i32
    %165 = tpu.dynamic_rotate %135 by %c364_i32_33 dim 1 : vector<9x384xf32>, i32 -> vector<9x384xf32>
    %166 = arith.index_cast %arg0 : i32 to index
    %c5_34 = arith.constant 5 : index
    %167 = memref.load %arg2[%166, %c5_34] : memref<4x18xf32, #tpu.memory_space<smem>>
    %168 = vector.broadcast %167 : f32 to vector<9x384xf32>
    %169 = arith.mulf %168, %165 : vector<9x384xf32>
    %170 = arith.addf %164, %169 : vector<9x384xf32>
    %c348_i32_35 = arith.constant 348 : i32
    %171 = tpu.dynamic_rotate %135 by %c348_i32_35 dim 1 : vector<9x384xf32>, i32 -> vector<9x384xf32>
    %172 = arith.index_cast %arg0 : i32 to index
    %c6_36 = arith.constant 6 : index
    %173 = memref.load %arg2[%172, %c6_36] : memref<4x18xf32, #tpu.memory_space<smem>>
    %174 = vector.broadcast %173 : f32 to vector<9x384xf32>
    %175 = arith.mulf %174, %171 : vector<9x384xf32>
    %176 = arith.addf %170, %175 : vector<9x384xf32>
    %c347_i32_37 = arith.constant 347 : i32
    %177 = tpu.dynamic_rotate %135 by %c347_i32_37 dim 1 : vector<9x384xf32>, i32 -> vector<9x384xf32>
    %178 = arith.index_cast %arg0 : i32 to index
    %c7_38 = arith.constant 7 : index
    %179 = memref.load %arg2[%178, %c7_38] : memref<4x18xf32, #tpu.memory_space<smem>>
    %180 = vector.broadcast %179 : f32 to vector<9x384xf32>
    %181 = arith.mulf %180, %177 : vector<9x384xf32>
    %182 = arith.addf %176, %181 : vector<9x384xf32>
    %c346_i32_39 = arith.constant 346 : i32
    %183 = tpu.dynamic_rotate %135 by %c346_i32_39 dim 1 : vector<9x384xf32>, i32 -> vector<9x384xf32>
    %184 = arith.index_cast %arg0 : i32 to index
    %c8_40 = arith.constant 8 : index
    %185 = memref.load %arg2[%184, %c8_40] : memref<4x18xf32, #tpu.memory_space<smem>>
    %186 = vector.broadcast %185 : f32 to vector<9x384xf32>
    %187 = arith.mulf %186, %183 : vector<9x384xf32>
    %188 = arith.addf %182, %187 : vector<9x384xf32>
    %189 = vector.extract_strided_slice %133 {offsets = [1, 0], sizes = [9, 384], strides = [1, 1]} : vector<10x384xf32> to vector<9x384xf32>
    %190 = arith.index_cast %arg0 : i32 to index
    %c9_41 = arith.constant 9 : index
    %191 = memref.load %arg2[%190, %c9_41] : memref<4x18xf32, #tpu.memory_space<smem>>
    %192 = vector.broadcast %191 : f32 to vector<9x384xf32>
    %193 = arith.mulf %192, %189 : vector<9x384xf32>
    %194 = arith.addf %188, %193 : vector<9x384xf32>
    %c383_i32_42 = arith.constant 383 : i32
    %195 = tpu.dynamic_rotate %189 by %c383_i32_42 dim 1 : vector<9x384xf32>, i32 -> vector<9x384xf32>
    %196 = arith.index_cast %arg0 : i32 to index
    %c10_43 = arith.constant 10 : index
    %197 = memref.load %arg2[%196, %c10_43] : memref<4x18xf32, #tpu.memory_space<smem>>
    %198 = vector.broadcast %197 : f32 to vector<9x384xf32>
    %199 = arith.mulf %198, %195 : vector<9x384xf32>
    %200 = arith.addf %194, %199 : vector<9x384xf32>
    %c382_i32_44 = arith.constant 382 : i32
    %201 = tpu.dynamic_rotate %189 by %c382_i32_44 dim 1 : vector<9x384xf32>, i32 -> vector<9x384xf32>
    %202 = arith.index_cast %arg0 : i32 to index
    %c11_45 = arith.constant 11 : index
    %203 = memref.load %arg2[%202, %c11_45] : memref<4x18xf32, #tpu.memory_space<smem>>
    %204 = vector.broadcast %203 : f32 to vector<9x384xf32>
    %205 = arith.mulf %204, %201 : vector<9x384xf32>
    %206 = arith.addf %200, %205 : vector<9x384xf32>
    %c366_i32_46 = arith.constant 366 : i32
    %207 = tpu.dynamic_rotate %189 by %c366_i32_46 dim 1 : vector<9x384xf32>, i32 -> vector<9x384xf32>
    %208 = arith.index_cast %arg0 : i32 to index
    %c12_47 = arith.constant 12 : index
    %209 = memref.load %arg2[%208, %c12_47] : memref<4x18xf32, #tpu.memory_space<smem>>
    %210 = vector.broadcast %209 : f32 to vector<9x384xf32>
    %211 = arith.mulf %210, %207 : vector<9x384xf32>
    %212 = arith.addf %206, %211 : vector<9x384xf32>
    %c365_i32_48 = arith.constant 365 : i32
    %213 = tpu.dynamic_rotate %189 by %c365_i32_48 dim 1 : vector<9x384xf32>, i32 -> vector<9x384xf32>
    %214 = arith.index_cast %arg0 : i32 to index
    %c13_49 = arith.constant 13 : index
    %215 = memref.load %arg2[%214, %c13_49] : memref<4x18xf32, #tpu.memory_space<smem>>
    %216 = vector.broadcast %215 : f32 to vector<9x384xf32>
    %217 = arith.mulf %216, %213 : vector<9x384xf32>
    %218 = arith.addf %212, %217 : vector<9x384xf32>
    %c364_i32_50 = arith.constant 364 : i32
    %219 = tpu.dynamic_rotate %189 by %c364_i32_50 dim 1 : vector<9x384xf32>, i32 -> vector<9x384xf32>
    %220 = arith.index_cast %arg0 : i32 to index
    %c14_51 = arith.constant 14 : index
    %221 = memref.load %arg2[%220, %c14_51] : memref<4x18xf32, #tpu.memory_space<smem>>
    %222 = vector.broadcast %221 : f32 to vector<9x384xf32>
    %223 = arith.mulf %222, %219 : vector<9x384xf32>
    %224 = arith.addf %218, %223 : vector<9x384xf32>
    %c348_i32_52 = arith.constant 348 : i32
    %225 = tpu.dynamic_rotate %189 by %c348_i32_52 dim 1 : vector<9x384xf32>, i32 -> vector<9x384xf32>
    %226 = arith.index_cast %arg0 : i32 to index
    %c15_53 = arith.constant 15 : index
    %227 = memref.load %arg2[%226, %c15_53] : memref<4x18xf32, #tpu.memory_space<smem>>
    %228 = vector.broadcast %227 : f32 to vector<9x384xf32>
    %229 = arith.mulf %228, %225 : vector<9x384xf32>
    %230 = arith.addf %224, %229 : vector<9x384xf32>
    %c347_i32_54 = arith.constant 347 : i32
    %231 = tpu.dynamic_rotate %189 by %c347_i32_54 dim 1 : vector<9x384xf32>, i32 -> vector<9x384xf32>
    %232 = arith.index_cast %arg0 : i32 to index
    %c16_55 = arith.constant 16 : index
    %233 = memref.load %arg2[%232, %c16_55] : memref<4x18xf32, #tpu.memory_space<smem>>
    %234 = vector.broadcast %233 : f32 to vector<9x384xf32>
    %235 = arith.mulf %234, %231 : vector<9x384xf32>
    %236 = arith.addf %230, %235 : vector<9x384xf32>
    %c346_i32_56 = arith.constant 346 : i32
    %237 = tpu.dynamic_rotate %189 by %c346_i32_56 dim 1 : vector<9x384xf32>, i32 -> vector<9x384xf32>
    %238 = arith.index_cast %arg0 : i32 to index
    %c17_57 = arith.constant 17 : index
    %239 = memref.load %arg2[%238, %c17_57] : memref<4x18xf32, #tpu.memory_space<smem>>
    %240 = vector.broadcast %239 : f32 to vector<9x384xf32>
    %241 = arith.mulf %240, %237 : vector<9x384xf32>
    %242 = arith.addf %236, %241 : vector<9x384xf32>
    %243 = vector.broadcast %5 : f32 to vector<9x384xf32>
    %244 = arith.subf %242, %243 : vector<9x384xf32>
    %245 = vector.broadcast %3 : vector<1x384xf32> to vector<9x384xf32>
    %246 = arith.mulf %244, %245 : vector<9x384xf32>
    %247 = vector.shape_cast %246 : vector<9x384xf32> to vector<1x9x384xf32>
    %cst_58 = arith.constant dense<0.000000e+00> : vector<1xf32>
    %248 = vector.multi_reduction <add>, %247, %cst_58 [1, 2] : vector<1x9x384xf32> to vector<1xf32>
    %249 = vector.shape_cast %248 : vector<1xf32> to vector<1x1x1xf32>
    %250 = vector.extract %249[0, 0, 0] : f32 from vector<1x1x1xf32>
    %251 = arith.addf %125, %250 : f32
    %252 = arith.mulf %246, %246 : vector<9x384xf32>
    %253 = vector.shape_cast %252 : vector<9x384xf32> to vector<1x9x384xf32>
    %cst_59 = arith.constant dense<0.000000e+00> : vector<1xf32>
    %254 = vector.multi_reduction <add>, %253, %cst_59 [1, 2] : vector<1x9x384xf32> to vector<1xf32>
    %255 = vector.shape_cast %254 : vector<1xf32> to vector<1x1x1xf32>
    %256 = vector.extract %255[0, 0, 0] : f32 from vector<1x1x1xf32>
    %257 = arith.addf %131, %256 : f32
    %258 = tpu.iota {dimensions = array<i32: 0>} : vector<2x128xi32>
    %c0_60 = arith.constant 0 : index
    %c0_61 = arith.constant 0 : index
    %c0_62 = arith.constant 0 : index
    %259 = vector.load %arg6[%c0_60, %c0_61, %c0_62] : memref<1x2x128xf32, #tpu.memory_space<vmem>>, vector<1x2x128xf32>
    %260 = vector.shape_cast %259 : vector<1x2x128xf32> to vector<2x128xf32>
    %c0_i32_63 = arith.constant 0 : i32
    %261 = vector.broadcast %c0_i32_63 : i32 to vector<2x128xi32>
    %262 = arith.cmpi eq, %258, %261 : vector<2x128xi32>
    %263 = vector.broadcast %251 : f32 to vector<2x128xf32>
    %264 = vector.broadcast %257 : f32 to vector<2x128xf32>
    %265 = arith.select %262, %263, %264 : vector<2x128xi1>, vector<2x128xf32>
    %266 = arith.addf %260, %265 : vector<2x128xf32>
    %c0_64 = arith.constant 0 : index
    %c0_65 = arith.constant 0 : index
    %c0_66 = arith.constant 0 : index
    %267 = vector.load %arg6[%c0_64, %c0_65, %c0_66] : memref<1x2x128xf32, #tpu.memory_space<vmem>>, vector<1x2x128xf32>
    %268 = vector.shape_cast %267 : vector<1x2x128xf32> to vector<2x128xf32>
    %269 = vector.shape_cast %266 : vector<2x128xf32> to vector<1x2x128xf32>
    tpu.vector_store %arg6[%c0_64, %c0_65, %c0_66], %269 {strides = array<i32>} : memref<1x2x128xf32, #tpu.memory_space<vmem>>, vector<1x2x128xf32>,
    return
  }
  func.func @transform_0(%arg0: i32, %arg1: i32, %arg2: memref<4x18xf32, #tpu.memory_space<smem>>, %arg3: memref<4xf32, #tpu.memory_space<smem>>) -> (i32, i32) {
    %c0_i32 = arith.constant 0 : i32
    %c0_i32_0 = arith.constant 0 : i32
    %c0_i32_1 = arith.constant 0 : i32
    return %c0_i32, %c0_i32_0 : i32, i32
  }
  func.func @transform_1(%arg0: i32, %arg1: i32, %arg2: memref<4x18xf32, #tpu.memory_space<smem>>, %arg3: memref<4xf32, #tpu.memory_space<smem>>) -> (i32, i32, i32, i32) {
    %c0_i32 = arith.constant 0 : i32
    %c0_i32_0 = arith.constant 0 : i32
    %c0_i32_1 = arith.constant 0 : i32
    return %arg1, %arg0, %c0_i32, %c0_i32_0 : i32, i32, i32, i32
  }
  func.func @transform_2(%arg0: i32, %arg1: i32, %arg2: memref<4x18xf32, #tpu.memory_space<smem>>, %arg3: memref<4xf32, #tpu.memory_space<smem>>) -> (i32, i32, i32) {
    %c0_i32 = arith.constant 0 : i32
    %c0_i32_0 = arith.constant 0 : i32
    %c0_i32_1 = arith.constant 0 : i32
    return %arg0, %c0_i32, %c0_i32_0 : i32, i32, i32
  }
}

</mosaic_0001>

<bundles_post_ra>
// kernel: tpu_custom_call.1
= control target key start
LH: loop header
LB: loop body
LE: loop exit
PB: predicated region body
PF: predicated region fallthrough
CT: control target
= control target key end

     0   :  { %s3880_s0 = inlined_call_operand.vmem [shape: f32[4,18], index: 0, kind: input, shape index: {}]   ;;  %s3881_s2 = inlined_call_operand.vmem [shape: f32[1,384], index: 2, kind: input, shape index: {}]   ;;  %s3882_s3 = inlined_call_operand.vmem [shape: f32[2,4,10,384], index: 3, kind: input, shape index: {}]   ;;  %s3883_s4 = inlined_call_operand.hbm [shape: f32[4,2,128], index: 4, kind: output, shape index: {}]   ;;  %s3884_s1 = inlined_call_operand.vmem [shape: f32[4], index: 1, kind: input, shape index: {}]  }
   0x1   :  { %s9_s17 = sshll.u32 %s3880_s0, 4  ;;  %s13_s20 = sshll.u32 %s3884_s1, 4  ;;  %s10_s17 = int_to_ptr.vmem [resolvable:$true] %s9_s17  ;;  %s14_s20 = int_to_ptr.vmem [resolvable:$true] %s13_s20 }
   0x2   :  { %s1711_s21 = scalar_lea.vmem %s10_s17, 64  ;;  %p1716_p1 = scmp.lt.s32.totalorder %s10_s17, %s10_s17 }
   0x3   :  { %p1712_p0 = scmp.ne.s32.totalorder %s10_s17, %s1711_s21  ;;  %p1717_p2 = scmp.lt.s32.totalorder %s1711_s21, %s1711_s21 }
   0x5   :  { %p1718_p3 = por %p1717_p2, %p1716_p1 }
   0x7   :  { %p1719_p4 = pnand %p1718_p3, %p1712_p0 }
   0x9   :  { %1722 = shalt.err (!%p1719_p4)  }
   0xa   :  { %s1817_s22 = smov [#allocation3]   ;;  %s1723_s23 = scalar_lea.vmem %s14_s20, 16 }
   0xb   :  { %12 = dma.vmem_to_smem %s10_s17, 64, %s1817_s22, [#allocation2] }
   0xc   :  { %p1724_p5 = scmp.ne.s32.totalorder %s14_s20, %s1723_s23  ;;  %p1728_p6 = scmp.lt.s32.totalorder %s14_s20, %s14_s20 }
   0xd   :  { %p1729_p7 = scmp.lt.s32.totalorder %s1723_s23, %s1723_s23 }
   0xf   :  { %p1730_p8 = por %p1729_p7, %p1728_p6 }
  0x11   :  { %p1731_p9 = pnand %p1730_p8, %p1724_p5 }
  0x13   :  { %1734 = shalt.err (!%p1731_p9)  }
  0x14   :  { %s1818_s0 = smov [#allocation4]  }
  0x15   :  { %16 = dma.vmem_to_smem %s14_s20, 16, %s1818_s0, [#allocation2] }
  0x16   :  { %1787 = dma.done.wait [#allocation2], 80 }
  0x17   :  { %1788 = vsyncadd [#allocation2], 4294967216 }
  0x18   :  { %18 = sfence }
  0x19   :  { %19 = vsyncpa [#allocation7], 0 }
  0x1a   :  { %21 = vsyncpa [#allocation7 + $0x1], 0  ;;  %s1860_s1 = smov 0   ;;  %s1862_s24 = smov 0  }
  0x1b   :  { %s1864_s25 = smov 0   ;;  %s1866_s26 = smov 0  }
  0x1c   :  { %s1868_s27 = smov 0   ;;  %s1870_s28 = smov 0  }
  0x1d LB: > { %s1616_s29 = sadd.s32 4294967295, %s1815_s28   ;;  %s1617_s30 = sadd.s32 4294967294, %s1815_s28   ;;  %s1815_s28 = sphi %s1870_s28, %s27_s28   ;;  %s1811_s27 = sphi %s1868_s27, %s4140_s27   ;;  %s1807_s26 = sphi %s1866_s26, %s4139_s26   ;;  %s1803_s25 = sphi %s1864_s25, %s4138_s25   ;;  %s1799_s24 = sphi %s1862_s24, %s4137_s24   ;;  %s1795_s1 = sphi %s1860_s1, %s4136_s1  }
  0x1e   : > { %s39_s5 = sadd.s32 1, %s1811_s27  ;;  %s69_s6 = sadd.s32 1, %s1803_s25 }
  0x1f   : > { %p41_p10 = scmp.ge.s32.totalorder %s39_s5, 4  ;;  %p76_p11 = scmp.ne.s32.totalorder %s1803_s25, %s1799_s24 }
  0x20   : > { %p77_p12 = scmp.eq.s32.totalorder %s1815_s28, 0  ;;  %p106_p13 = scmp.eq.s32.totalorder %s1616_s29, 3 }
  0x21   : > { %s4142_s5 = smov (%p41_p10, %s39_s5), 0  ;;  %p111_p2 = scmp.ne.s32.totalorder %s1799_s24, %s1795_s1 }
  0x22   : > { %p78_p0 = por %p77_p12, %p76_p11  ;;  %p1899_p1 = por %p106_p13, %p76_p11 }
  0x23   : > { %s65_s8 = ssub.s32 %s1811_s27, %s4142_s5  ;;  %p112_p4 = scmp.eq.s32.totalorder %s1617_s30, 3 }
  0x24   : > { %p67_p3 = scmp.eq.s32.totalorder %s65_s8, 0  ;;  %p1619_p6 = scmp.ge.s32.totalorder %s1815_s28, 4 }
  0x25   : > { %p1910_p5 = por %p112_p4, %p111_p2 }
  0x26   : > { %s1908_s9 = scalar_select %p67_p3, %s1803_s25, %s69_s6  }
  0x27   : > { %131 = sbr.rel (%p1619_p6) target bundleno = 57 (0x39), region = 20 }
  0x2e   : > { %134 = sbr.rel (!%p78_p0) target bundleno = 57 (0x39), region = 24  ;;  %s136_s11 = sand.u32 (%p78_p0), 1, %s1803_s25  }
  0x2f   : > { %s1635_s12 = smul.u32 (%p78_p0), 48, %s1811_s27 }
  0x30   : > { %s1634_s13 = smul.u32 (%p78_p0), 96, %s136_s11 }
  0x31   : > { %s144_s16 = scalar_lea.vmem (%p78_p0), %s3882_s3, %s1635_s12 }
  0x32   : > { %v157_v0 = vld [vmem:[%s144_s16] sm:$0xff] (%p78_p0)  ;;  %v159_v1 = vld [vmem:[%s144_s16 + $0x8] sm:$0xff] (%p78_p0)  ;;  %v161_v2 = vld [vmem:[%s144_s16 + $0x10] sm:$0xff] (%p78_p0)  ;;  %s138_s17 = scalar_lea.vmem (%p78_p0), [#allocation5], %s1634_s13 }
  0x33   : > { %158 = vst [vmem:[%s138_s17] sm:$0xff] (%p78_p0), %v157_v0  ;;  %160 = vst [vmem:[%s138_s17 + $0x8] sm:$0xff] (%p78_p0), %v159_v1  ;;  %v163_v3 = vld [vmem:[%s144_s16 + $0x18] sm:$0xff] (%p78_p0)  ;;  %v165_v4 = vld [vmem:[%s144_s16 + $0x20] sm:$0xff] (%p78_p0) }
  0x34   : > { %162 = vst [vmem:[%s138_s17 + $0x10] sm:$0xff] (%p78_p0), %v161_v2  ;;  %v167_v5 = vld [vmem:[%s144_s16 + $0x28] sm:$0xff] (%p78_p0)  ;;  %164 = vst [vmem:[%s138_s17 + $0x18] sm:$0xff] (%p78_p0), %v163_v3  ;;  %v169_v6 = vld [vmem:[%s144_s16 + $0xc0] sm:$0xff] (%p78_p0) }
  0x35   : > { %166 = vst [vmem:[%s138_s17 + $0x20] sm:$0xff] %v165_v4  ;;  %168 = vst [vmem:[%s138_s17 + $0x28] sm:$0xff] %v167_v5  ;;  %v171_v7 = vld [vmem:[%s144_s16 + $0xc8] sm:$0xff]  ;;  %v173_v8 = vld [vmem:[%s144_s16 + $0xd0] sm:$0xff] }
  0x36   : > { %170 = vst [vmem:[%s138_s17 + $0x30] sm:$0xff] %v169_v6  ;;  %172 = vst [vmem:[%s138_s17 + $0x38] sm:$0xff] %v171_v7  ;;  %v175_v9 = vld [vmem:[%s144_s16 + $0xd8] sm:$0xff]  ;;  %v177_v10 = vld [vmem:[%s144_s16 + $0xe0] sm:$0xff] }
  0x37   : > { %174 = vst [vmem:[%s138_s17 + $0x40] sm:$0xff] %v173_v8  ;;  %v179_v11 = vld [vmem:[%s144_s16 + $0xe8] sm:$0xff]  ;;  %176 = vst [vmem:[%s138_s17 + $0x48] sm:$0xff] %v175_v9 }
  0x38   : > { %178 = vst [vmem:[%s138_s17 + $0x50] sm:$0xff] %v177_v10  ;;  %180 = vst [vmem:[%s138_s17 + $0x58] sm:$0xff] %v179_v11 }
  0x39 PF: > { %p1621_p7 = scmp.ge.s32.totalorder %s1815_s28, 1  ;;  %p185_p8 = scmp.lt.s32.totalorder %s1815_s28, 5 }
  0x3b   : > { %p186_p9 = pnand %p1621_p7, %p185_p8 }
  0x3d   : > { %189 = sbr.rel (%p186_p9) target bundleno = 815 (0x32f), region = 47 }
  0x44   : > { %s1923_s18 = sand.u32 1, %s1799_s24   ;;  %s1819_s21 = smov 127   ;;  %vm531_vm0 = vcmask 1046528   ;;  %vm869_vm9 = vcmask 1040384  }
  0x45   : > { %s1636_s19 = smul.u32 96, %s1923_s18  ;;  %s1820_s22 = smov 126  }
  0x46   : > { %s1821_s23 = smov 110   ;;  %s1822_s0 = smov 109  }
  0x47   : > { %s1926_s20 = scalar_lea.vmem [#allocation5], %s1636_s19  ;;  %s1823_s29 = smov 108  }
  0x48   : > { %v1929_v12 = vld [vmem:[%s1926_s20 + $0x8] sm:$0xff]  ;;  %v1932_v13 = vld [vmem:[%s1926_s20] sm:$0xff]  ;;  %v1942_v15 = vld [vmem:[%s1926_s20 + $0x18] sm:$0x3]  ;;  %s1824_s30 = smov 92   ;;  %s1825_s6 = smov 91  }
  0x49   : > { %246 = vrot.lane.b32.xlu1 %v1929_v12, %s1819_s21  ;;  %242 = vrot.lane.b32.xlu0 %v1932_v13, %s1819_s21  ;;  %v1939_v14 = vld [vmem:[%s1926_s20 + $0x20] sm:$0x3]  ;;  %v1949_v16 = vld [vmem:[%s1926_s20 + $0x28] sm:$0x3]  ;;  %s1826_s8 = smov 90   ;;  %v2039_v18 = vrot.slane %v1942_v15, 1 }
  0x4a   : > { %v1952_v17 = vld [vmem:[%s1926_s20 + $0x10] sm:$0xff]  ;;  %v559_v19 = vrot.slane %v1932_v13, 1  ;;  %v2051_v21 = vrot.slane %v1939_v14, 1  ;;  %v562_v22 = vrot.slane %v1929_v12, 1  ;;  %v2063_v24 = vrot.slane %v1949_v16, 1  ;;  %v2218_v60 = vld [vmem:[%s1926_s20 + $0x40] sm:$0xff] }
  0x4b   : > { %v565_v25 = vrot.slane %v1952_v17, 1  ;;  %v2207_v57 = vld [vmem:[%s1926_s20 + $0x30] sm:$0xff]  ;;  %3993 = vst [vmem:[#allocation32_spill] sm:$0xff] %v2218_v60  ;;  %v2225_v63 = vld [vmem:[%s1926_s20 + $0x38] sm:$0xff]  ;;  %v2240_v2 = vld [vmem:[%s1926_s20 + $0x48] sm:$0x3] }
  0x4c   : > { %v2048_v20 = vsel %vm531_vm0, %v559_v19, %v2039_v18  ;;  %3971 = vst [vmem:[#allocation10_spill] sm:$0xff] %v2051_v21  ;;  %v2060_v23 = vsel %vm531_vm0, %v562_v22, %v2051_v21  ;;  %3990 = vst [vmem:[#allocation29_spill] sm:$0xff] %v2207_v57  ;;  %v2255_v7 = vld [vmem:[%s1926_s20 + $0x50] sm:$0x3]  ;;  %v2274_v19 = vld [vmem:[%s1926_s20 + $0x58] sm:$0x3] }
  0x4d   : > { %248 = vrot.lane.b32.xlu1 %v1939_v14, %s1819_s21  ;;  %244 = vrot.lane.b32.xlu0 %v1942_v15, %s1819_s21  ;;  %v2072_v26 = vsel %vm531_vm0, %v565_v25, %v2063_v24  ;;  %3996 = vst [vmem:[#allocation35_spill] sm:$0xff] %v2225_v63  ;;  %s2491_s11 = sshll.u32 %s1807_s26, 7 }
  0x4e   : > { %s263_s12 = sadd.s32 1, %s2491_s11  ;;  %s228_s13 = sld [smem:[#allocation3 + %s2491_s11]] }
  0x4f   : > { %s297_s14 = sadd.s32 2, %s2491_s11  ;;  %s264_s15 = sld [smem:[#allocation3 + %s263_s12]] }
  0x50   : > { %s331_s16 = sadd.s32 3, %s2491_s11  ;;  %s298_s17 = sld [smem:[#allocation3 + %s297_s14]] }
  0x51   : > { %252 = vrot.lane.b32.xlu1 %v1949_v16, %s1819_s21  ;;  %250 = vrot.lane.b32.xlu0 %v1952_v17, %s1819_s21  ;;  %s365_s19 = sadd.s32 4, %s2491_s11  ;;  %s2516_s20 = sld [smem:[#allocation3 + %s331_s16]] }
  0x52   : > { %s433_s12 = sadd.s32 6, %s2491_s11  ;;  %s501_s16 = sadd.s32 8, %s2491_s11 }
  0x55   : > { %280 = vrot.lane.b32.xlu1 %v1942_v15, %s1820_s22  ;;  %278 = vrot.lane.b32.xlu0 %v1932_v13, %s1820_s22 }
  0x59   : > { %284 = vrot.lane.b32.xlu1 %v1939_v14, %s1820_s22  ;;  %282 = vrot.lane.b32.xlu0 %v1929_v12, %s1820_s22 }
  0x5d   : > { %288 = vrot.lane.b32.xlu1 %v1949_v16, %s1820_s22  ;;  %286 = vrot.lane.b32.xlu0 %v1952_v17, %s1820_s22 }
  0x61   : > { %314 = vrot.lane.b32.xlu1 %v1942_v15, %s1821_s23  ;;  %312 = vrot.lane.b32.xlu0 %v1932_v13, %s1821_s23 }
  0x65   : > { %318 = vrot.lane.b32.xlu1 %v1939_v14, %s1821_s23  ;;  %316 = vrot.lane.b32.xlu0 %v1929_v12, %s1821_s23 }
  0x69   : > { %322 = vrot.lane.b32.xlu1 %v1949_v16, %s1821_s23  ;;  %320 = vrot.lane.b32.xlu0 %v1952_v17, %s1821_s23 }
  0x6d   : > { %348 = vrot.lane.b32.xlu1 %v1942_v15, %s1822_s0  ;;  %346 = vrot.lane.b32.xlu0 %v1932_v13, %s1822_s0 }
  0x71   : > { %352 = vrot.lane.b32.xlu1 %v1939_v14, %s1822_s0  ;;  %350 = vrot.lane.b32.xlu0 %v1929_v12, %s1822_s0 }
  0x75   : > { %356 = vrot.lane.b32.xlu1 %v1949_v16, %s1822_s0  ;;  %354 = vrot.lane.b32.xlu0 %v1952_v17, %s1822_s0 }
  0x79   : > { %382 = vrot.lane.b32.xlu1 %v1942_v15, %s1823_s29  ;;  %380 = vrot.lane.b32.xlu0 %v1932_v13, %s1823_s29 }
  0x7d   : > { %386 = vrot.lane.b32.xlu1 %v1939_v14, %s1823_s29  ;;  %384 = vrot.lane.b32.xlu0 %v1929_v12, %s1823_s29 }
  0x81   : > { %390 = vrot.lane.b32.xlu1 %v1949_v16, %s1823_s29  ;;  %388 = vrot.lane.b32.xlu0 %v1952_v17, %s1823_s29 }
  0x85   : > { %416 = vrot.lane.b32.xlu1 %v1942_v15, %s1824_s30  ;;  %414 = vrot.lane.b32.xlu0 %v1932_v13, %s1824_s30 }
  0x89   : > { %420 = vrot.lane.b32.xlu1 %v1939_v14, %s1824_s30  ;;  %418 = vrot.lane.b32.xlu0 %v1929_v12, %s1824_s30 }
  0x8d   : > { %424 = vrot.lane.b32.xlu1 %v1949_v16, %s1824_s30  ;;  %422 = vrot.lane.b32.xlu0 %v1952_v17, %s1824_s30 }
  0x91   : > { %450 = vrot.lane.b32.xlu1 %v1942_v15, %s1825_s6  ;;  %448 = vrot.lane.b32.xlu0 %v1932_v13, %s1825_s6 }
  0x95   : > { %454 = vrot.lane.b32.xlu1 %v1939_v14, %s1825_s6  ;;  %452 = vrot.lane.b32.xlu0 %v1929_v12, %s1825_s6 }
  0x99   : > { %458 = vrot.lane.b32.xlu1 %v1949_v16, %s1825_s6  ;;  %456 = vrot.lane.b32.xlu0 %v1952_v17, %s1825_s6 }
  0x9d   : > { %484 = vrot.lane.b32.xlu1 %v1942_v15, %s1826_s8  ;;  %482 = vrot.lane.b32.xlu0 %v1932_v13, %s1826_s8 }
  0xa1   : > { %488 = vrot.lane.b32.xlu1 %v1939_v14, %s1826_s8  ;;  %486 = vrot.lane.b32.xlu0 %v1929_v12, %s1826_s8 }
  0xa5   : > { %492 = vrot.lane.b32.xlu1 %v1949_v16, %s1826_s8  ;;  %490 = vrot.lane.b32.xlu0 %v1952_v17, %s1826_s8 }
  0xa9   : > { %576 = vrot.lane.b32.xlu1 %v2039_v18, %s1819_s21  ;;  %574 = vrot.lane.b32.xlu0 %v2048_v20, %s1819_s21 }
  0xad   : > { %580 = vrot.lane.b32.xlu1 %v2051_v21, %s1819_s21  ;;  %578 = vrot.lane.b32.xlu0 %v2060_v23, %s1819_s21 }
  0xb1   : > { %584 = vrot.lane.b32.xlu1 %v2063_v24, %s1819_s21  ;;  %582 = vrot.lane.b32.xlu0 %v2072_v26, %s1819_s21 }
  0xb5   : > { %609 = vrot.lane.b32.xlu1 %v2039_v18, %s1820_s22  ;;  %607 = vrot.lane.b32.xlu0 %v2048_v20, %s1820_s22 }
  0xb9   : > { %613 = vrot.lane.b32.xlu1 %v2051_v21, %s1820_s22  ;;  %611 = vrot.lane.b32.xlu0 %v2060_v23, %s1820_s22 }
  0xbb   : > { %v2086_v27 = vpop.permute.xlu1 %246  ;;  %v2088_v28 = vpop.permute.xlu0 %242 }
  0xbd   : > { %617 = vrot.lane.b32.xlu1 %v2063_v24, %s1820_s22  ;;  %615 = vrot.lane.b32.xlu0 %v2072_v26, %s1820_s22 }
  0xbf   : > { %v2094_v29 = vpop.permute.xlu1 %248  ;;  %v2096_v30 = vpop.permute.xlu0 %244 }
  0xc1   : > { %642 = vrot.lane.b32.xlu1 %v2039_v18, %s1821_s23  ;;  %640 = vrot.lane.b32.xlu0 %v2048_v20, %s1821_s23 }
  0xc3   : > { %v2102_v31 = vpop.permute.xlu1 %252  ;;  %v2104_v32 = vpop.permute.xlu0 %250 }
  0xc5   : > { %646 = vrot.lane.b32.xlu1 %v2051_v21, %s1821_s23  ;;  %644 = vrot.lane.b32.xlu0 %v2060_v23, %s1821_s23 }
  0xc7   : > { %v2110_v33 = vpop.permute.xlu1 %280  ;;  %v2112_v34 = vpop.permute.xlu0 %278 }
  0xc9   : > { %650 = vrot.lane.b32.xlu1 %v2063_v24, %s1821_s23  ;;  %648 = vrot.lane.b32.xlu0 %v2072_v26, %s1821_s23 }
  0xcb   : > { %v2118_v35 = vpop.permute.xlu1 %284  ;;  %v2120_v36 = vpop.permute.xlu0 %282 }
  0xcd   : > { %675 = vrot.lane.b32.xlu1 %v2039_v18, %s1822_s0  ;;  %673 = vrot.lane.b32.xlu0 %v2048_v20, %s1822_s0 }
  0xcf   : > { %v2126_v37 = vpop.permute.xlu1 %288  ;;  %v2128_v38 = vpop.permute.xlu0 %286 }
  0xd1   : > { %679 = vrot.lane.b32.xlu1 %v2051_v21, %s1822_s0  ;;  %677 = vrot.lane.b32.xlu0 %v2060_v23, %s1822_s0 }
  0xd3   : > { %v2134_v39 = vpop.permute.xlu1 %314  ;;  %v2136_v40 = vpop.permute.xlu0 %312 }
  0xd4   : > { %3972 = vst [vmem:[#allocation11_spill] sm:$0xff] %v2134_v39  ;;  %3973 = vst [vmem:[#allocation12_spill] sm:$0xff] %v2136_v40 }
  0xd5   : > { %683 = vrot.lane.b32.xlu1 %v2063_v24, %s1822_s0  ;;  %681 = vrot.lane.b32.xlu0 %v2072_v26, %s1822_s0 }
  0xd7   : > { %v2142_v41 = vpop.permute.xlu1 %318  ;;  %v2144_v42 = vpop.permute.xlu0 %316 }
  0xd8   : > { %3974 = vst [vmem:[#allocation13_spill] sm:$0xff] %v2142_v41  ;;  %3975 = vst [vmem:[#allocation14_spill] sm:$0xff] %v2144_v42 }
  0xd9   : > { %708 = vrot.lane.b32.xlu1 %v2039_v18, %s1823_s29  ;;  %706 = vrot.lane.b32.xlu0 %v2048_v20, %s1823_s29 }
  0xdb   : > { %v2150_v43 = vpop.permute.xlu1 %322  ;;  %v2152_v44 = vpop.permute.xlu0 %320 }
  0xdc   : > { %3976 = vst [vmem:[#allocation15_spill] sm:$0xff] %v2150_v43  ;;  %3977 = vst [vmem:[#allocation16_spill] sm:$0xff] %v2152_v44  ;;  %v2552_v43 = vstv %s298_s17  ;;  %s2696_s17 = sld [smem:[#allocation3 + %s501_s16]] }
  0xdd   : > { %712 = vrot.lane.b32.xlu1 %v2051_v21, %s1823_s29  ;;  %710 = vrot.lane.b32.xlu0 %v2060_v23, %s1823_s29 }
  0xdf   : > { %v2158_v45 = vpop.permute.xlu1 %348  ;;  %v2160_v46 = vpop.permute.xlu0 %346 }
  0xe0   : > { %3978 = vst [vmem:[#allocation17_spill] sm:$0xff] %v2158_v45  ;;  %3979 = vst [vmem:[#allocation18_spill] sm:$0xff] %v2160_v46 }
  0xe1   : > { %716 = vrot.lane.b32.xlu1 %v2063_v24, %s1823_s29  ;;  %714 = vrot.lane.b32.xlu0 %v2072_v26, %s1823_s29 }
  0xe3   : > { %v2166_v47 = vpop.permute.xlu1 %352  ;;  %v2168_v48 = vpop.permute.xlu0 %350 }
  0xe4   : > { %3980 = vst [vmem:[#allocation19_spill] sm:$0xff] %v2166_v47  ;;  %3981 = vst [vmem:[#allocation20_spill] sm:$0xff] %v2168_v48 }
  0xe5   : > { %741 = vrot.lane.b32.xlu1 %v2039_v18, %s1824_s30  ;;  %739 = vrot.lane.b32.xlu0 %v2048_v20, %s1824_s30 }
  0xe7   : > { %v2174_v49 = vpop.permute.xlu1 %356  ;;  %v2176_v50 = vpop.permute.xlu0 %354 }
  0xe8   : > { %3982 = vst [vmem:[#allocation21_spill] sm:$0xff] %v2174_v49  ;;  %3983 = vst [vmem:[#allocation22_spill] sm:$0xff] %v2176_v50  ;;  %v2536_v49 = vstv %s264_s15  ;;  %s467_s15 = sadd.s32 7, %s2491_s11 }
  0xe9   : > { %745 = vrot.lane.b32.xlu1 %v2051_v21, %s1824_s30  ;;  %743 = vrot.lane.b32.xlu0 %v2060_v23, %s1824_s30 }
  0xeb   : > { %v2182_v51 = vpop.permute.xlu1 %382  ;;  %v2184_v52 = vpop.permute.xlu0 %380 }
  0xec   : > { %3984 = vst [vmem:[#allocation23_spill] sm:$0xff] %v2182_v51  ;;  %3985 = vst [vmem:[#allocation24_spill] sm:$0xff] %v2184_v52 }
  0xed   : > { %749 = vrot.lane.b32.xlu1 %v2063_v24, %s1824_s30  ;;  %747 = vrot.lane.b32.xlu0 %v2072_v26, %s1824_s30 }
  0xef   : > { %v2190_v53 = vpop.permute.xlu1 %386  ;;  %v2192_v54 = vpop.permute.xlu0 %384 }
  0xf0   : > { %3986 = vst [vmem:[#allocation25_spill] sm:$0xff] %v2190_v53  ;;  %3987 = vst [vmem:[#allocation26_spill] sm:$0xff] %v2192_v54  ;;  %v2529_v53 = vstv %s228_s13  ;;  %s516_s13 = sadd.s32 9, %s2491_s11 }
  0xf1   : > { %774 = vrot.lane.b32.xlu1 %v2039_v18, %s1825_s6  ;;  %772 = vrot.lane.b32.xlu0 %v2048_v20, %s1825_s6  ;;  %v919_v46 = vmul.f32 %v2218_v60, %v2529_v53  ;;  %v918_v40 = vmul.f32 %v2225_v63, %v2529_v53  ;;  %s517_s14 = sld [smem:[#allocation3 + %s516_s13]] }
  0xf3   : > { %v2198_v55 = vpop.permute.xlu1 %390  ;;  %v2200_v56 = vpop.permute.xlu0 %388 }
  0xf4   : > { %3988 = vst [vmem:[#allocation27_spill] sm:$0xff] %v2198_v55  ;;  %3989 = vst [vmem:[#allocation28_spill] sm:$0xff] %v2200_v56 }
  0xf5   : > { %778 = vrot.lane.b32.xlu1 %v2051_v21, %s1825_s6  ;;  %776 = vrot.lane.b32.xlu0 %v2060_v23, %s1825_s6 }
  0xf7   : > { %v2209_v58 = vpop.permute.xlu1 %416  ;;  %v2211_v59 = vpop.permute.xlu0 %414 }
  0xf8   : > { %3991 = vst [vmem:[#allocation30_spill] sm:$0xff] %v2209_v58  ;;  %3992 = vst [vmem:[#allocation31_spill] sm:$0xff] %v2211_v59  ;;  %v3946_v59 = vlaneseq }
  0xf9   : > { %929 = vrot.lane.b32.xlu1 %v2207_v57, %s1819_s21  ;;  %780 = vrot.lane.b32.xlu0 %v2072_v26, %s1825_s6 }
  0xfb   : > { %v2220_v61 = vpop.permute.xlu1 %420  ;;  %v2222_v62 = vpop.permute.xlu0 %418 }
  0xfc   : > { %3994 = vst [vmem:[#allocation33_spill] sm:$0xff] %v2220_v61  ;;  %3995 = vst [vmem:[#allocation34_spill] sm:$0xff] %v2222_v62  ;;  %v2507_v61 = vand.u32 127, %v3946_v59 }
  0xfd   : > { %937 = vrot.lane.b32.xlu1 %v2218_v60, %s1819_s21  ;;  %933 = vrot.lane.b32.xlu0 %v2225_v63, %s1819_s21 }
  0xfe   : > { %vm324_vm1 = vcmp.lt.s32.totalorder %v2507_v61, 110  ;;  %vm256_vm2 = vcmp.lt.s32.totalorder %v2507_v61, 127  ;;  %vm290_vm3 = vcmp.lt.s32.totalorder %v2507_v61, 126  ;;  %vm358_vm4 = vcmp.lt.s32.totalorder %v2507_v61, 109 }
  0xff   : > { %v2231_v0 = vpop.permute.xlu1 %424  ;;  %v2233_v1 = vpop.permute.xlu0 %422  ;;  %vm392_vm5 = vcmp.lt.s32.totalorder %v2507_v61, 108  ;;  %vm426_vm6 = vcmp.lt.s32.totalorder %v2507_v61, 92  ;;  %vm460_vm7 = vcmp.lt.s32.totalorder %v2507_v61, 91  ;;  %vm494_vm8 = vcmp.lt.s32.totalorder %v2507_v61, 90 }
 0x100   : > { %3997 = vst [vmem:[#allocation36_spill] sm:$0xff] %v2231_v0  ;;  %3998 = vst [vmem:[#allocation37_spill] sm:$0xff] %v2233_v1 }
 0x101   : > { %963 = vrot.lane.b32.xlu1 %v2225_v63, %s1820_s22  ;;  %959 = vrot.lane.b32.xlu0 %v2207_v57, %s1820_s22 }
 0x103   : > { %v2242_v3 = vpop.permute.xlu1 %450  ;;  %v2244_v4 = vpop.permute.xlu0 %448 }
 0x104   : > { %3999 = vst [vmem:[#allocation38_spill] sm:$0xff] %v2242_v3  ;;  %4000 = vst [vmem:[#allocation39_spill] sm:$0xff] %v2244_v4  ;;  %v2416_v4 = vrot.slane %v2240_v2, 1  ;;  %v1214_v3 = vrot.slane %v2218_v60, 1 }
 0x105   : > { %931 = vrot.lane.b32.xlu1 %v2240_v2, %s1819_s21  ;;  %967 = vrot.lane.b32.xlu0 %v2218_v60, %s1820_s22 }
 0x107   : > { %v2250_v5 = vpop.permute.xlu1 %454  ;;  %v2252_v6 = vpop.permute.xlu0 %452 }
 0x108   : > { %4001 = vst [vmem:[#allocation40_spill] sm:$0xff] %v2250_v5  ;;  %4002 = vst [vmem:[#allocation41_spill] sm:$0xff] %v2252_v6 }
 0x109   : > { %989 = vrot.lane.b32.xlu1 %v2207_v57, %s1821_s23  ;;  %935 = vrot.lane.b32.xlu0 %v2255_v7, %s1819_s21 }
 0x10b   : > { %v2261_v8 = vpop.permute.xlu1 %458  ;;  %v2263_v9 = vpop.permute.xlu0 %456 }
 0x10c   : > { %4003 = vst [vmem:[#allocation42_spill] sm:$0xff] %v2261_v8  ;;  %4004 = vst [vmem:[#allocation43_spill] sm:$0xff] %v2263_v9  ;;  %v1208_v8 = vrot.slane %v2207_v57, 1 }
 0x10d   : > { %997 = vrot.lane.b32.xlu1 %v2218_v60, %s1821_s23  ;;  %993 = vrot.lane.b32.xlu0 %v2225_v63, %s1821_s23 }
 0x10f   : > { %v2269_v10 = vpop.permute.xlu1 %484  ;;  %v2271_v11 = vpop.permute.xlu0 %482 }
 0x110   : > { %4005 = vst [vmem:[#allocation44_spill] sm:$0xff] %v2269_v10  ;;  %4006 = vst [vmem:[#allocation45_spill] sm:$0xff] %v2271_v11 }
 0x111   : > { %961 = vrot.lane.b32.xlu1 %v2240_v2, %s1820_s22  ;;  %939 = vrot.lane.b32.xlu0 %v2274_v19, %s1819_s21 }
 0x113   : > { %v2280_v22 = vpop.permute.xlu1 %488  ;;  %v2282_v25 = vpop.permute.xlu0 %486 }
 0x114   : > { %4007 = vst [vmem:[#allocation46_spill] sm:$0xff] %v2280_v22  ;;  %4008 = vst [vmem:[#allocation47_spill] sm:$0xff] %v2282_v25 }
 0x115   : > { %1019 = vrot.lane.b32.xlu1 %v2207_v57, %s1822_s0  ;;  %965 = vrot.lane.b32.xlu0 %v2255_v7, %s1820_s22 }
 0x117   : > { %v2288_v10 = vpop.permute.xlu1 %492  ;;  %v2290_v11 = vpop.permute.xlu0 %490 }
 0x118   : > { %4009 = vst [vmem:[#allocation48_spill] sm:$0xff] %v2288_v10  ;;  %4010 = vst [vmem:[#allocation49_spill] sm:$0xff] %v2290_v11 }
 0x119   : > { %1027 = vrot.lane.b32.xlu1 %v2218_v60, %s1822_s0  ;;  %1023 = vrot.lane.b32.xlu0 %v2225_v63, %s1822_s0 }
 0x11b   : > { %v2296_v9 = vpop.permute.xlu1 %576  ;;  %v2298_v22 = vpop.permute.xlu0 %574 }
 0x11c   : > { %4011 = vst [vmem:[#allocation50_spill] sm:$0xff] %v2296_v9  ;;  %4012 = vst [vmem:[#allocation51_spill] sm:$0xff] %v2298_v22 }
 0x11d   : > { %991 = vrot.lane.b32.xlu1 %v2240_v2, %s1821_s23  ;;  %969 = vrot.lane.b32.xlu0 %v2274_v19, %s1820_s22 }
 0x11f   : > { %v2304_v25 = vpop.permute.xlu1 %580  ;;  %v2306_v10 = vpop.permute.xlu0 %578 }
 0x120   : > { %4013 = vst [vmem:[#allocation52_spill] sm:$0xff] %v2304_v25  ;;  %4014 = vst [vmem:[#allocation53_spill] sm:$0xff] %v2306_v10 }
 0x121   : > { %1049 = vrot.lane.b32.xlu1 %v2207_v57, %s1823_s29  ;;  %995 = vrot.lane.b32.xlu0 %v2255_v7, %s1821_s23 }
 0x123   : > { %v2312_v11 = vpop.permute.xlu1 %584  ;;  %v2314_v9 = vpop.permute.xlu0 %582 }
 0x124   : > { %4015 = vst [vmem:[#allocation54_spill] sm:$0xff] %v2312_v11  ;;  %4016 = vst [vmem:[#allocation55_spill] sm:$0xff] %v2314_v9 }
 0x125   : > { %1057 = vrot.lane.b32.xlu1 %v2218_v60, %s1823_s29  ;;  %1053 = vrot.lane.b32.xlu0 %v2225_v63, %s1823_s29 }
 0x127   : > { %v2320_v22 = vpop.permute.xlu1 %609  ;;  %v2322_v25 = vpop.permute.xlu0 %607 }
 0x128   : > { %4017 = vst [vmem:[#allocation56_spill] sm:$0xff] %v2320_v22  ;;  %4018 = vst [vmem:[#allocation57_spill] sm:$0xff] %v2322_v25 }
 0x129   : > { %1021 = vrot.lane.b32.xlu1 %v2240_v2, %s1822_s0  ;;  %999 = vrot.lane.b32.xlu0 %v2274_v19, %s1821_s23 }
 0x12b   : > { %v2328_v10 = vpop.permute.xlu1 %613  ;;  %v2330_v11 = vpop.permute.xlu0 %611 }
 0x12c   : > { %4019 = vst [vmem:[#allocation58_spill] sm:$0xff] %v2328_v10  ;;  %4020 = vst [vmem:[#allocation59_spill] sm:$0xff] %v2330_v11 }
 0x12d   : > { %1079 = vrot.lane.b32.xlu1 %v2207_v57, %s1824_s30  ;;  %1025 = vrot.lane.b32.xlu0 %v2255_v7, %s1822_s0 }
 0x12f   : > { %v2336_v9 = vpop.permute.xlu1 %617  ;;  %v2338_v22 = vpop.permute.xlu0 %615 }
 0x130   : > { %4021 = vst [vmem:[#allocation60_spill] sm:$0xff] %v2336_v9  ;;  %4022 = vst [vmem:[#allocation61_spill] sm:$0xff] %v2338_v22 }
 0x131   : > { %1087 = vrot.lane.b32.xlu1 %v2218_v60, %s1824_s30  ;;  %1083 = vrot.lane.b32.xlu0 %v2225_v63, %s1824_s30 }
 0x133   : > { %v2344_v25 = vpop.permute.xlu1 %642  ;;  %v2346_v10 = vpop.permute.xlu0 %640 }
 0x134   : > { %4023 = vst [vmem:[#allocation62_spill] sm:$0xff] %v2344_v25  ;;  %4024 = vst [vmem:[#allocation63_spill] sm:$0xff] %v2346_v10 }
 0x135   : > { %1051 = vrot.lane.b32.xlu1 %v2240_v2, %s1823_s29  ;;  %1029 = vrot.lane.b32.xlu0 %v2274_v19, %s1822_s0 }
 0x137   : > { %v2352_v11 = vpop.permute.xlu1 %646  ;;  %v2354_v9 = vpop.permute.xlu0 %644 }
 0x138   : > { %4025 = vst [vmem:[#allocation64_spill] sm:$0xff] %v2352_v11  ;;  %4026 = vst [vmem:[#allocation65_spill] sm:$0xff] %v2354_v9 }
 0x139   : > { %1109 = vrot.lane.b32.xlu1 %v2207_v57, %s1825_s6  ;;  %1055 = vrot.lane.b32.xlu0 %v2255_v7, %s1823_s29 }
 0x13b   : > { %v2360_v22 = vpop.permute.xlu1 %650  ;;  %v2362_v25 = vpop.permute.xlu0 %648 }
 0x13c   : > { %4027 = vst [vmem:[#allocation66_spill] sm:$0xff] %v2360_v22  ;;  %4028 = vst [vmem:[#allocation67_spill] sm:$0xff] %v2362_v25 }
 0x13d   : > { %1117 = vrot.lane.b32.xlu1 %v2218_v60, %s1825_s6  ;;  %1113 = vrot.lane.b32.xlu0 %v2225_v63, %s1825_s6 }
 0x13f   : > { %v2368_v10 = vpop.permute.xlu1 %675  ;;  %v2370_v11 = vpop.permute.xlu0 %673 }
 0x140   : > { %4029 = vst [vmem:[#allocation68_spill] sm:$0xff] %v2368_v10  ;;  %4030 = vst [vmem:[#allocation69_spill] sm:$0xff] %v2370_v11 }
 0x141   : > { %1081 = vrot.lane.b32.xlu1 %v2240_v2, %s1824_s30  ;;  %1059 = vrot.lane.b32.xlu0 %v2274_v19, %s1823_s29 }
 0x143   : > { %v2376_v9 = vpop.permute.xlu1 %679  ;;  %v2378_v22 = vpop.permute.xlu0 %677 }
 0x144   : > { %4031 = vst [vmem:[#allocation70_spill] sm:$0xff] %v2376_v9  ;;  %4032 = vst [vmem:[#allocation71_spill] sm:$0xff] %v2378_v22 }
 0x145   : > { %1139 = vrot.lane.b32.xlu1 %v2207_v57, %s1826_s8  ;;  %1085 = vrot.lane.b32.xlu0 %v2255_v7, %s1824_s30 }
 0x147   : > { %v2384_v25 = vpop.permute.xlu1 %683  ;;  %v2386_v10 = vpop.permute.xlu0 %681 }
 0x148   : > { %4033 = vst [vmem:[#allocation72_spill] sm:$0xff] %v2384_v25  ;;  %4034 = vst [vmem:[#allocation73_spill] sm:$0xff] %v2386_v10 }
 0x149   : > { %1147 = vrot.lane.b32.xlu1 %v2218_v60, %s1826_s8  ;;  %1143 = vrot.lane.b32.xlu0 %v2225_v63, %s1826_s8 }
 0x14b   : > { %v2392_v11 = vpop.permute.xlu1 %708  ;;  %v2394_v9 = vpop.permute.xlu0 %706 }
 0x14c   : > { %4035 = vst [vmem:[#allocation74_spill] sm:$0xff] %v2392_v11  ;;  %4036 = vst [vmem:[#allocation75_spill] sm:$0xff] %v2394_v9  ;;  %v1211_v11 = vrot.slane %v2225_v63, 1  ;;  %v2410_v9 = vrot.slane %v2255_v7, 1 }
 0x14d   : > { %1111 = vrot.lane.b32.xlu1 %v2240_v2, %s1825_s6  ;;  %1089 = vrot.lane.b32.xlu0 %v2274_v19, %s1824_s30 }
 0x14f   : > { %v2400_v22 = vpop.permute.xlu1 %712  ;;  %v2402_v25 = vpop.permute.xlu0 %710 }
 0x150   : > { %4037 = vst [vmem:[#allocation76_spill] sm:$0xff] %v2400_v22  ;;  %4038 = vst [vmem:[#allocation77_spill] sm:$0xff] %v2402_v25  ;;  %v2426_v25 = vsel %vm531_vm0, %v1211_v11, %v2410_v9 }
 0x151   : > { %1119 = vrot.lane.b32.xlu1 %v2274_v19, %s1825_s6  ;;  %1115 = vrot.lane.b32.xlu0 %v2255_v7, %s1825_s6 }
 0x153   : > { %v2412_v10 = vpop.permute.xlu1 %716  ;;  %v2418_v22 = vpop.permute.xlu0 %714 }
 0x154   : > { %4039 = vst [vmem:[#allocation78_spill] sm:$0xff] %v2412_v10  ;;  %4040 = vst [vmem:[#allocation79_spill] sm:$0xff] %v2418_v22  ;;  %v2432_v10 = vsel %vm531_vm0, %v1208_v8, %v2416_v4  ;;  %v2436_v22 = vrot.slane %v2274_v19, 1 }
 0x155   : > { %1145 = vrot.lane.b32.xlu1 %v2255_v7, %s1826_s8  ;;  %1141 = vrot.lane.b32.xlu0 %v2240_v2, %s1826_s8 }
 0x157   : > { %v2428_v6 = vpop.permute.xlu1 %741  ;;  %v2438_v5 = vpop.permute.xlu0 %739 }
 0x158   : > { %4041 = vst [vmem:[#allocation80_spill] sm:$0xff] %v2428_v6  ;;  %4042 = vst [vmem:[#allocation81_spill] sm:$0xff] %v2438_v5  ;;  %v2448_v6 = vsel %vm531_vm0, %v1214_v3, %v2436_v22 }
 0x159   : > { %1227 = vrot.lane.b32.xlu1 %v2426_v25, %s1819_s21  ;;  %1223 = vrot.lane.b32.xlu0 %v2432_v10, %s1819_s21 }
 0x15b   : > { %v2444_v11 = vpop.permute.xlu1 %745  ;;  %v2450_v8 = vpop.permute.xlu0 %743 }
 0x15c   : > { %4043 = vst [vmem:[#allocation82_spill] sm:$0xff] %v2444_v11  ;;  %4044 = vst [vmem:[#allocation83_spill] sm:$0xff] %v2450_v8 }
 0x15d   : > { %1149 = vrot.lane.b32.xlu1 %v2274_v19, %s1826_s8  ;;  %1231 = vrot.lane.b32.xlu0 %v2448_v6, %s1819_s21 }
 0x15f   : > { %v2456_v5 = vpop.permute.xlu1 %749  ;;  %v2458_v1 = vpop.permute.xlu0 %747 }
 0x160   : > { %4045 = vst [vmem:[#allocation84_spill] sm:$0xff] %v2456_v5  ;;  %4046 = vst [vmem:[#allocation85_spill] sm:$0xff] %v2458_v1 }
 0x161   : > { %1257 = vrot.lane.b32.xlu1 %v2426_v25, %s1820_s22  ;;  %1253 = vrot.lane.b32.xlu0 %v2432_v10, %s1820_s22 }
 0x163   : > { %v2464_v3 = vpop.permute.xlu1 %774  ;;  %v2466_v11 = vpop.permute.xlu0 %772 }
 0x164   : > { %4047 = vst [vmem:[#allocation86_spill] sm:$0xff] %v2464_v3  ;;  %4048 = vst [vmem:[#allocation87_spill] sm:$0xff] %v2466_v11 }
 0x165   : > { %1225 = vrot.lane.b32.xlu1 %v2416_v4, %s1819_s21  ;;  %1261 = vrot.lane.b32.xlu0 %v2448_v6, %s1820_s22 }
 0x167   : > { %v2472_v5 = vpop.permute.xlu1 %778  ;;  %v2474_v1 = vpop.permute.xlu0 %776 }
 0x168   : > { %4049 = vst [vmem:[#allocation88_spill] sm:$0xff] %v2472_v5  ;;  %4050 = vst [vmem:[#allocation89_spill] sm:$0xff] %v2474_v1 }
 0x169   : > { %1283 = vrot.lane.b32.xlu1 %v2432_v10, %s1821_s23  ;;  %1229 = vrot.lane.b32.xlu0 %v2410_v9, %s1819_s21 }
 0x16b   : > { %v930_v3 = vpop.permute.xlu1 %929  ;;  %v2480_v8 = vpop.permute.xlu0 %780 }
 0x16c   : > { %4051 = vst [vmem:[#allocation90_spill] sm:$0xff] %v2480_v8 }
 0x16d   : > { %1291 = vrot.lane.b32.xlu1 %v2448_v6, %s1821_s23  ;;  %1287 = vrot.lane.b32.xlu0 %v2426_v25, %s1821_s23 }
 0x16f   : > { %v938_v11 = vpop.permute.xlu1 %937  ;;  %v934_v0 = vpop.permute.xlu0 %933 }
 0x170   : > { %v945_v54 = vsel %vm256_vm2, %v938_v11, %v930_v3  ;;  %v943_v51 = vsel %vm256_vm2, %v930_v3, %v934_v0  ;;  %v941_v50 = vsel %vm256_vm2, %v934_v0, %v938_v11  ;;  %v917_v0 = vmul.f32 %v2207_v57, %v2529_v53 }
 0x171   : > { %1255 = vrot.lane.b32.xlu1 %v2416_v4, %s1820_s22  ;;  %1233 = vrot.lane.b32.xlu0 %v2436_v22, %s1819_s21  ;;  %s2521_s21 = sld [smem:[#allocation3 + %s365_s19]]  ;;  %v949_v47 = vmul.f32 %v945_v54, %v2536_v49  ;;  %v947_v11 = vmul.f32 %v943_v51, %v2536_v49  ;;  %s592_s19 = sadd.s32 10, %s2491_s11 }
 0x173   : > { %v964_v1 = vpop.permute.xlu1 %963  ;;  %v960_v5 = vpop.permute.xlu0 %959  ;;  %v955_v39 = vadd.f32 %v949_v47, %v919_v46 }
 0x174   : > { %v973_v3 = vsel %vm290_vm3, %v960_v5, %v964_v1 }
 0x175   : > { %1313 = vrot.lane.b32.xlu1 %v2432_v10, %s1822_s0  ;;  %1259 = vrot.lane.b32.xlu0 %v2410_v9, %s1820_s22  ;;  %v977_v51 = vmul.f32 %v973_v3, %v2552_v43 }
 0x177   : > { %v2497_v8 = vpop.permute.xlu1 %931  ;;  %v968_v62 = vpop.permute.xlu0 %967 }
 0x178   : > { %v975_v48 = vsel %vm290_vm3, %v968_v62, %v960_v5  ;;  %v971_v44 = vsel %vm290_vm3, %v964_v1, %v968_v62  ;;  %v948_v5 = vmul.f32 %v941_v50, %v2536_v49  ;;  %v2566_v62 = vstv %s2516_s20  ;;  %s2753_s20 = sld [smem:[#allocation3 + %s592_s19]] }
 0x179   : > { %1321 = vrot.lane.b32.xlu1 %v2448_v6, %s1822_s0  ;;  %1317 = vrot.lane.b32.xlu0 %v2426_v25, %s1822_s0  ;;  %v979_v42 = vmul.f32 %v975_v48, %v2552_v43  ;;  %v978_v1 = vmul.f32 %v971_v44, %v2552_v43  ;;  %v2575_v48 = vstv %s2521_s21  ;;  %s625_s21 = sadd.s32 11, %s2491_s11 }
 0x17a   : > { %v954_v21 = vadd.f32 %v948_v5, %v918_v40  ;;  %v921_v40 = vmul.f32 %v2255_v7, %v2529_v53 }
 0x17b   : > { %v990_v58 = vpop.permute.xlu1 %989  ;;  %v936_v56 = vpop.permute.xlu0 %935  ;;  %v985_v47 = vadd.f32 %v979_v42, %v955_v39 }
 0x17c   : > { %v944_v42 = vsel %vm256_vm2, %v2497_v8, %v936_v56 }
 0x17d   : > { %1285 = vrot.lane.b32.xlu1 %v2416_v4, %s1821_s23  ;;  %1263 = vrot.lane.b32.xlu0 %v2436_v22, %s1820_s22  ;;  %s399_s22 = sadd.s32 5, %s2491_s11 }
 0x17f   : > { %v998_v55 = vpop.permute.xlu1 %997  ;;  %v994_v52 = vpop.permute.xlu0 %993 }
 0x180   : > { %v1005_v59 = vsel %vm324_vm1, %v998_v55, %v990_v58  ;;  %v1003_v54 = vsel %vm324_vm1, %v990_v58, %v994_v52  ;;  %v1001_v50 = vsel %vm324_vm1, %v994_v52, %v998_v55  ;;  %v953_v58 = vadd.f32 %v947_v11, %v917_v0 }
 0x181   : > { %1343 = vrot.lane.b32.xlu1 %v2432_v10, %s1823_s29  ;;  %1289 = vrot.lane.b32.xlu0 %v2410_v9, %s1821_s23  ;;  %v1009_v41 = vmul.f32 %v1005_v59, %v2566_v62  ;;  %v1007_v57 = vmul.f32 %v1003_v54, %v2566_v62  ;;  %v1008_v52 = vmul.f32 %v1001_v50, %v2566_v62 }
 0x182   : > { %v983_v46 = vadd.f32 %v977_v51, %v953_v58  ;;  %v984_v59 = vadd.f32 %v978_v1, %v954_v21  ;;  %v922_v0 = vmul.f32 %v2274_v19, %v2529_v53 }
 0x183   : > { %v2544_v45 = vpop.permute.xlu1 %961  ;;  %v940_v60 = vpop.permute.xlu0 %939  ;;  %v1015_v5 = vadd.f32 %v1009_v41, %v985_v47 }
 0x184   : > { %v942_v55 = vsel %vm256_vm2, %v936_v56, %v940_v60  ;;  %v946_v11 = vsel %vm256_vm2, %v940_v60, %v2497_v8  ;;  %v1013_v54 = vadd.f32 %v1007_v57, %v983_v46  ;;  %v1014_v41 = vadd.f32 %v1008_v52, %v984_v59 }
 0x185   : > { %1351 = vrot.lane.b32.xlu1 %v2448_v6, %s1823_s29  ;;  %1347 = vrot.lane.b32.xlu0 %v2426_v25, %s1823_s29  ;;  %v951_v1 = vmul.f32 %v942_v55, %v2536_v49  ;;  %v952_v56 = vmul.f32 %v946_v11, %v2536_v49  ;;  %v920_v55 = vmul.f32 %v2240_v2, %v2529_v53 }
 0x187   : > { %v1020_v63 = vpop.permute.xlu1 %1019  ;;  %v966_v3 = vpop.permute.xlu0 %965  ;;  %v957_v59 = vadd.f32 %v951_v1, %v921_v40 }
 0x188   : > { %v974_v44 = vsel %vm290_vm3, %v2544_v45, %v966_v3 }
 0x189   : > { %1315 = vrot.lane.b32.xlu1 %v2416_v4, %s1822_s0  ;;  %1293 = vrot.lane.b32.xlu0 %v2436_v22, %s1821_s23  ;;  %s400_s23 = sld [smem:[#allocation3 + %s399_s22]]  ;;  %s658_s22 = sadd.s32 12, %s2491_s11 }
 0x18b   : > { %v1028_v39 = vpop.permute.xlu1 %1027  ;;  %v1024_v51 = vpop.permute.xlu0 %1023 }
 0x18c   : > { %v1035_v21 = vsel %vm358_vm4, %v1028_v39, %v1020_v63  ;;  %v1031_v58 = vsel %vm358_vm4, %v1024_v51, %v1028_v39  ;;  %v1033_v60 = vsel %vm358_vm4, %v1020_v63, %v1024_v51  ;;  %v950_v63 = vmul.f32 %v944_v42, %v2536_v49 }
 0x18d   : > { %v1039_v50 = vmul.f32 %v1035_v21, %v2575_v48  ;;  %1373 = vrot.lane.b32.xlu1 %v2432_v10, %s1824_s30  ;;  %v1037_v57 = vmul.f32 %v1033_v60, %v2575_v48  ;;  %v1038_v8 = vmul.f32 %v1031_v58, %v2575_v48  ;;  %1319 = vrot.lane.b32.xlu0 %v2410_v9, %s1822_s0 }
 0x18f   : > { %v1045_v46 = vadd.f32 %v1039_v50, %v1015_v5  ;;  %v992_v47 = vpop.permute.xlu1 %991  ;;  %v1043_v39 = vadd.f32 %v1037_v57, %v1013_v54  ;;  %v1044_v21 = vadd.f32 %v1038_v8, %v1014_v41  ;;  %v970_v52 = vpop.permute.xlu0 %969  ;;  %v958_v5 = vadd.f32 %v952_v56, %v922_v0 }
 0x190   : > { %v972_v11 = vsel %vm290_vm3, %v966_v3, %v970_v52  ;;  %v976_v51 = vsel %vm290_vm3, %v970_v52, %v2544_v45  ;;  %v980_v50 = vmul.f32 %v974_v44, %v2552_v43  ;;  %v956_v3 = vadd.f32 %v950_v63, %v920_v55 }
 0x191   : > { %1381 = vrot.lane.b32.xlu1 %v2448_v6, %s1824_s30  ;;  %v981_v58 = vmul.f32 %v972_v11, %v2552_v43  ;;  %v982_v42 = vmul.f32 %v976_v51, %v2552_v43  ;;  %1377 = vrot.lane.b32.xlu0 %v2426_v25, %s1824_s30  ;;  %v2636_v56 = vstv %s400_s23  ;;  %s691_s23 = sadd.s32 13, %s2491_s11 }
 0x192   : > { %v986_v44 = vadd.f32 %v980_v50, %v956_v3  ;;  %s2806_s13 = sld [smem:[#allocation3 + %s691_s23]] }
 0x193   : > { %v1050_v40 = vpop.permute.xlu1 %1049  ;;  %v987_v54 = vadd.f32 %v981_v58, %v957_v59  ;;  %v988_v1 = vadd.f32 %v982_v42, %v958_v5  ;;  %v996_v60 = vpop.permute.xlu0 %995 }
 0x194   : > { %v1004_v45 = vsel %vm324_vm1, %v992_v47, %v996_v60 }
 0x195   : > { %1345 = vrot.lane.b32.xlu1 %v2416_v4, %s1823_s29  ;;  %v1010_v0 = vmul.f32 %v1004_v45, %v2566_v62  ;;  %1323 = vrot.lane.b32.xlu0 %v2436_v22, %s1822_s0  ;;  %s434_s0 = sld [smem:[#allocation3 + %s433_s12]] }
 0x196   : > { %s2786_s12 = sld [smem:[#allocation3 + %s625_s21]]  ;;  %s1622_s21 = sshll.u32 %s1923_s18, 1 }
 0x197   : > { %v1058_v41 = vpop.permute.xlu1 %1057  ;;  %v1016_v57 = vadd.f32 %v1010_v0, %v986_v44  ;;  %v1054_v55 = vpop.permute.xlu0 %1053 }
 0x198   : > { %v1065_v8 = vsel %vm392_vm5, %v1058_v41, %v1050_v40  ;;  %v1061_v52 = vsel %vm392_vm5, %v1054_v55, %v1058_v41  ;;  %v1063_v59 = vsel %vm392_vm5, %v1050_v40, %v1054_v55 }
 0x199   : > { %v1069_v63 = vmul.f32 %v1065_v8, %v2636_v56  ;;  %1403 = vrot.lane.b32.xlu1 %v2432_v10, %s1825_s6  ;;  %v1067_v11 = vmul.f32 %v1063_v59, %v2636_v56  ;;  %v1068_v51 = vmul.f32 %v1061_v52, %v2636_v56  ;;  %1349 = vrot.lane.b32.xlu0 %v2410_v9, %s1823_s29 }
 0x19b   : > { %v1075_v5 = vadd.f32 %v1069_v63, %v1045_v46  ;;  %v1022_v50 = vpop.permute.xlu1 %1021  ;;  %v1073_v58 = vadd.f32 %v1067_v11, %v1043_v39  ;;  %v1074_v42 = vadd.f32 %v1068_v51, %v1044_v21  ;;  %v1000_v3 = vpop.permute.xlu0 %999  ;;  %v2671_v55 = vstv %s434_s0  ;;  %s2788_s0 = sld [smem:[#allocation3 + %s658_s22]]  ;;  %s3821_s22 = scalar_lea.vmem [#allocation6], %s1622_s21 }
 0x19c   : > { %v1002_v40 = vsel %vm324_vm1, %v996_v60, %v1000_v3  ;;  %v1006_v45 = vsel %vm324_vm1, %v1000_v3, %v992_v47  ;;  %v2690_v3 = vstv %s517_s14 }
 0x19d   : > { %1411 = vrot.lane.b32.xlu1 %v2448_v6, %s1825_s6  ;;  %v1011_v44 = vmul.f32 %v1002_v40, %v2566_v62  ;;  %v1012_v46 = vmul.f32 %v1006_v45, %v2566_v62  ;;  %1407 = vrot.lane.b32.xlu0 %v2426_v25, %s1825_s6 }
 0x19f   : > { %v1080_v39 = vpop.permute.xlu1 %1079  ;;  %v1017_v21 = vadd.f32 %v1011_v44, %v987_v54  ;;  %v1018_v0 = vadd.f32 %v1012_v46, %v988_v1  ;;  %v1026_v60 = vpop.permute.xlu0 %1025 }
 0x1a0   : > { %v1034_v47 = vsel %vm358_vm4, %v1022_v50, %v1026_v60 }
 0x1a1   : > { %1375 = vrot.lane.b32.xlu1 %v2416_v4, %s1824_s30  ;;  %v1040_v41 = vmul.f32 %v1034_v47, %v2575_v48  ;;  %1353 = vrot.lane.b32.xlu0 %v2436_v22, %s1823_s29  ;;  %s2688_s29 = sld [smem:[#allocation3 + %s467_s15]] }
 0x1a3   : > { %v1088_v8 = vpop.permute.xlu1 %1087  ;;  %v1046_v54 = vadd.f32 %v1040_v41, %v1016_v57  ;;  %v1084_v63 = vpop.permute.xlu0 %1083 }
 0x1a4   : > { %v1095_v1 = vsel %vm426_vm6, %v1088_v8, %v1080_v39  ;;  %v1091_v59 = vsel %vm426_vm6, %v1084_v63, %v1088_v8  ;;  %v1093_v11 = vsel %vm426_vm6, %v1080_v39, %v1084_v63  ;;  %v520_v8 = vmul.f32 %v2690_v3, %v1929_v12 }
 0x1a5   : > { %v1099_v52 = vmul.f32 %v1095_v1, %v2671_v55  ;;  %805 = vrot.lane.b32.xlu1 %v2048_v20, %s1826_s8  ;;  %v1097_v51 = vmul.f32 %v1093_v11, %v2671_v55  ;;  %v1098_v57 = vmul.f32 %v1091_v59, %v2671_v55  ;;  %1379 = vrot.lane.b32.xlu0 %v2410_v9, %s1824_s30 }
 0x1a6   : > { %v2747_v59 = vmul.f32 %v2529_v53, %v1949_v16  ;;  %v2751_v11 = vmul.f32 %v2529_v53, %v1929_v12 }
 0x1a7   : > { %v2692_v40 = vadd.f32 %v1099_v52, %v1075_v5  ;;  %v2694_v45 = vpop.permute.xlu1 %1051  ;;  %v2698_v44 = vadd.f32 %v1097_v51, %v1073_v58  ;;  %v2700_v20 = vadd.f32 %v1098_v57, %v1074_v42  ;;  %v1030_v46 = vpop.permute.xlu0 %1029  ;;  %v2710_v5 = vmul.f32 %v2690_v3, %v1942_v15 }
 0x1a8   : > { %v1032_v39 = vsel %vm358_vm4, %v1026_v60, %v1030_v46  ;;  %v1036_v47 = vsel %vm358_vm4, %v1030_v46, %v1022_v50  ;;  %v519_v58 = vmul.f32 %v2690_v3, %v1932_v13  ;;  %v2721_v50 = vmul.f32 %v2529_v53, %v1932_v13 }
 0x1a9   : > { %813 = vrot.lane.b32.xlu1 %v2072_v26, %s1826_s8  ;;  %v1041_v42 = vmul.f32 %v1032_v39, %v2575_v48  ;;  %v1042_v41 = vmul.f32 %v1036_v47, %v2575_v48  ;;  %809 = vrot.lane.b32.xlu0 %v2060_v23, %s1826_s8  ;;  %v2725_v26 = vmul.f32 %v2529_v53, %v1942_v15  ;;  %v3967_v12 = vrot.slane %v2710_v5, 1 }
 0x1aa   : > { %v2729_v60 = vmul.f32 %v2690_v3, %v1939_v14  ;;  %v2735_v23 = vmul.f32 %v2529_v53, %v1939_v14  ;;  %v2739_v13 = vmul.f32 %v2690_v3, %v1949_v16  ;;  %v521_v14 = vmul.f32 %v2690_v3, %v1952_v17 }
 0x1ab   : > { %v1110_v1 = vpop.permute.xlu1 %1109  ;;  %v2741_v15 = vadd.f32 %v1041_v42, %v1017_v21  ;;  %v2743_v63 = vadd.f32 %v1042_v41, %v1018_v0  ;;  %v1056_v52 = vpop.permute.xlu0 %1055  ;;  %v2764_v16 = vmul.f32 %v2529_v53, %v1952_v17  ;;  %v532_v0 = vrot.slane %v519_v58, 1 }
 0x1ac   : > { %v1064_v21 = vsel %vm392_vm5, %v2694_v45, %v1056_v52  ;;  %v2774_v57 = vstv %s2688_s29  ;;  %v535_v46 = vrot.slane %v520_v8, 1  ;;  %v2779_v53 = vstv %s2696_s17  ;;  %s823_s29 = sadd.s32 17, %s2491_s11  ;;  %s3570_s17 = sld [smem:[#allocation4 + %s1807_s26]] }
 0x1ad   : > { %1437 = vrot.lane.b32.xlu1 %v2426_v25, %s1826_s8  ;;  %v1070_v51 = vmul.f32 %v1064_v21, %v2636_v56  ;;  %1433 = vrot.lane.b32.xlu0 %v2432_v10, %s1826_s8  ;;  %v536_v25 = vrot.slane %v2729_v60, 1  ;;  %v3968_v39 = vrot.slane %v2739_v13, 1  ;;  %v538_v10 = vrot.slane %v521_v14, 1 }
 0x1ae   : > { %v2804_v14 = vsel %vm531_vm0, %v532_v0, %v3967_v12  ;;  %v258_v0 = vsel %vm256_vm2, %v2094_v29, %v2102_v31 }
 0x1af   : > { %v1118_v17 = vpop.permute.xlu1 %1117  ;;  %v2782_v47 = vadd.f32 %v1070_v51, %v1046_v54  ;;  %v1114_v42 = vpop.permute.xlu0 %1113  ;;  %v259_v54 = vsel %vm256_vm2, %v2088_v28, %v2086_v27 }
 0x1b0   : > { %v1125_v58 = vsel %vm460_vm7, %v1118_v17, %v1110_v1  ;;  %v1121_v8 = vsel %vm460_vm7, %v1114_v42, %v1118_v17  ;;  %v1123_v21 = vsel %vm460_vm7, %v1110_v1, %v1114_v42  ;;  %v260_v1 = vsel %vm256_vm2, %v2096_v30, %v2094_v29 }
 0x1b1   : > { %v1129_v41 = vmul.f32 %v1125_v58, %v2774_v57  ;;  %1383 = vrot.lane.b32.xlu1 %v2436_v22, %s1824_s30  ;;  %v1127_v51 = vmul.f32 %v1123_v21, %v2774_v57  ;;  %v1128_v17 = vmul.f32 %v1121_v8, %v2774_v57  ;;  %1441 = vrot.lane.b32.xlu0 %v2448_v6, %s1826_s8  ;;  %s724_s30 = sadd.s32 14, %s2491_s11 }
 0x1b2   : > { %v2824_v58 = vsel %vm531_vm0, %v535_v46, %v536_v25  ;;  %v262_v8 = vsel %vm256_vm2, %v2102_v31, %v2096_v30  ;;  %v257_v29 = vsel %vm256_vm2, %v2086_v27, %v2104_v32  ;;  %v269_v31 = vmul.f32 %v2536_v49, %v260_v1  ;;  %s2895_s14 = sld [smem:[#allocation3 + %s724_s30]] }
 0x1b3   : > { %v1135_v6 = vadd.f32 %v1129_v41, %v2692_v40  ;;  %v2827_v42 = vpop.permute.xlu1 %1081  ;;  %v1133_v21 = vadd.f32 %v1127_v51, %v2698_v44  ;;  %v1134_v12 = vadd.f32 %v1128_v17, %v2700_v20  ;;  %v1060_v46 = vpop.permute.xlu0 %1059  ;;  %v266_v40 = vmul.f32 %v2536_v49, %v259_v54 }
 0x1b4   : > { %v2843_v41 = vsel %vm531_vm0, %v538_v10, %v3968_v39  ;;  %v1062_v30 = vsel %vm392_vm5, %v1056_v52, %v1060_v46  ;;  %v1066_v27 = vsel %vm392_vm5, %v1060_v46, %v2694_v45  ;;  %v2854_v44 = vstv %s2753_s20 }
 0x1b5   : > { %1409 = vrot.lane.b32.xlu1 %v2410_v9, %s1825_s6  ;;  %v1071_v20 = vmul.f32 %v1062_v30, %v2636_v56  ;;  %v1072_v10 = vmul.f32 %v1066_v27, %v2636_v56  ;;  %1405 = vrot.lane.b32.xlu0 %v2416_v4, %s1825_s6  ;;  %v270_v52 = vmul.f32 %v2536_v49, %v258_v0  ;;  %v2883_v30 = vstv %s2788_s0 }
 0x1b6   : > { %v271_v45 = vmul.f32 %v2536_v49, %v262_v8  ;;  %v261_v54 = vsel %vm256_vm2, %v2104_v32, %v2088_v28  ;;  %v267_v51 = vmul.f32 %v2536_v49, %v257_v29  ;;  %v294_v1 = vsel %vm290_vm3, %v2110_v33, %v2118_v35 }
 0x1b7   : > { %v1140_v17 = vpop.permute.xlu1 %1139  ;;  %v293_v0 = vsel %vm290_vm3, %v2112_v34, %v2120_v36  ;;  %v1077_v8 = vadd.f32 %v1071_v20, %v2741_v15  ;;  %v1078_v46 = vadd.f32 %v1072_v10, %v2743_v63  ;;  %v1086_v28 = vpop.permute.xlu0 %1085  ;;  %v272_v32 = vadd.f32 %v266_v40, %v2721_v50 }
 0x1b8   : > { %v2880_v29 = vstv %s2786_s12  ;;  %v1094_v27 = vsel %vm426_vm6, %v2827_v42, %v1086_v28  ;;  %v275_v39 = vadd.f32 %v269_v31, %v2725_v26  ;;  %v268_v15 = vmul.f32 %v2536_v49, %v261_v54 }
 0x1b9   : > { %807 = vrot.lane.b32.xlu1 %v2039_v18, %s1826_s8  ;;  %v2893_v20 = vstv %s2806_s13  ;;  %v1100_v50 = vmul.f32 %v1094_v27, %v2671_v55  ;;  %782 = vrot.lane.b32.xlu0 %v2063_v24, %s1825_s6  ;;  %v2901_v63 = vadd.f32 %v270_v52, %v2735_v23  ;;  %v2904_v40 = vadd.f32 %v271_v45, %v2747_v59 }
 0x1ba   : > { %v303_v18 = vmul.f32 %v2552_v43, %v294_v1  ;;  %v300_v26 = vmul.f32 %v2552_v43, %v293_v0  ;;  %v2909_v31 = vadd.f32 %v267_v51, %v2751_v11  ;;  %v292_v10 = vsel %vm290_vm3, %v2118_v35, %v2126_v37  ;;  %v4052_v1 = vld [vmem:[#allocation10_spill] sm:$0xff] }
 0x1bb   : > { %v1148_v49 = vpop.permute.xlu1 %1147  ;;  %v1106_v54 = vadd.f32 %v1100_v50, %v2782_v47  ;;  %v1144_v59 = vpop.permute.xlu0 %1143  ;;  %v296_v52 = vsel %vm290_vm3, %v2126_v37, %v2110_v33  ;;  %v291_v35 = vsel %vm290_vm3, %v2120_v36, %v2128_v38  ;;  %v295_v33 = vsel %vm290_vm3, %v2128_v38, %v2112_v34 }
 0x1bc   : > { %v1155_v23 = vsel %vm494_vm8, %v1148_v49, %v1140_v17  ;;  %v1151_v11 = vsel %vm494_vm8, %v1144_v59, %v1148_v49  ;;  %v1153_v51 = vsel %vm494_vm8, %v1140_v17, %v1144_v59  ;;  %v2942_v17 = vadd.f32 %v268_v15, %v2764_v16 }
 0x1bd   : > { %v1159_v45 = vmul.f32 %v1155_v23, %v2779_v53  ;;  %1413 = vrot.lane.b32.xlu1 %v2436_v22, %s1825_s6  ;;  %v1157_v37 = vmul.f32 %v1153_v51, %v2779_v53  ;;  %v1158_v47 = vmul.f32 %v1151_v11, %v2779_v53  ;;  %811 = vrot.lane.b32.xlu0 %v4052_v1, %s1826_s8  ;;  %s757_s6 = sadd.s32 15, %s2491_s11 }
 0x1be   : > { %v2944_v0 = vadd.f32 %v303_v18, %v275_v39  ;;  %v2946_v27 = vadd.f32 %v300_v26, %v272_v32  ;;  %v304_v34 = vmul.f32 %v2552_v43, %v292_v10  ;;  %v305_v38 = vmul.f32 %v2552_v43, %v296_v52  ;;  %v4055_v26 = vld [vmem:[#allocation11_spill] sm:$0xff]  ;;  %v4056_v10 = vld [vmem:[#allocation14_spill] sm:$0xff]  ;;  %v4057_v52 = vld [vmem:[#allocation12_spill] sm:$0xff]  ;;  %s3006_s15 = sld [smem:[#allocation3 + %s757_s6]]  ;;  %s1631_s6 = sshll.u32 %s1807_s26, 5 }
 0x1bf   : > { %v2948_v36 = vadd.f32 %v1159_v45, %v1135_v6  ;;  %v1112_v50 = vpop.permute.xlu1 %1111  ;;  %v2952_v49 = vadd.f32 %v1157_v37, %v1133_v21  ;;  %v2954_v23 = vadd.f32 %v1158_v47, %v1134_v12  ;;  %v1090_v59 = vpop.permute.xlu0 %1089  ;;  %v301_v16 = vmul.f32 %v2552_v43, %v291_v35  ;;  %v4058_v45 = vld [vmem:[#allocation15_spill] sm:$0xff]  ;;  %s1828_s26 = smov [#allocation6]  }
 0x1c0   : > { %v302_v39 = vmul.f32 %v2552_v43, %v295_v33  ;;  %v1092_v32 = vsel %vm426_vm6, %v1086_v28, %v1090_v59  ;;  %v1096_v6 = vsel %vm426_vm6, %v1090_v59, %v2827_v42  ;;  %v2966_v21 = vstv %s2895_s14  ;;  %v4053_v43 = vld [vmem:[#allocation29_spill] sm:$0xff]  ;;  %s1739_s19 = sshll.u32 %s1828_s26, 4  ;;  %s1740_s19 = int_to_ptr.vmem [resolvable:$false] %s1739_s19 }
 0x1c1   : > { %1439 = vrot.lane.b32.xlu1 %v2410_v9, %s1826_s8  ;;  %v1101_v12 = vmul.f32 %v1092_v32, %v2671_v55  ;;  %v1102_v15 = vmul.f32 %v1096_v6, %v2671_v55  ;;  %1435 = vrot.lane.b32.xlu0 %v2416_v4, %s1826_s8  ;;  %v1169_v18 = vmul.f32 %v4053_v43, %v2690_v3  ;;  %v4054_v28 = vld [vmem:[#allocation13_spill] sm:$0xff]  ;;  %v4059_v6 = vld [vmem:[#allocation35_spill] sm:$0xff]  ;;  %s1741_s20 = scalar_lea.vmem %s1740_s19, 64 }
 0x1c2   : > { %v328_v42 = vsel %vm324_vm1, %v4055_v26, %v4054_v28  ;;  %v327_v9 = vsel %vm324_vm1, %v4057_v52, %v4056_v10  ;;  %v326_v11 = vsel %vm324_vm1, %v4054_v28, %v4058_v45  ;;  %v2989_v51 = vmul.f32 %v2240_v2, %v2690_v3 }
 0x1c3   : > { %v1120_v4 = vpop.permute.xlu1 %1119  ;;  %v330_v35 = vsel %vm324_vm1, %v4058_v45, %v4055_v26  ;;  %v1107_v33 = vadd.f32 %v1101_v12, %v1077_v8  ;;  %v1108_v37 = vadd.f32 %v1102_v15, %v1078_v46  ;;  %v1116_v1 = vpop.permute.xlu0 %1115  ;;  %v1170_v43 = vmul.f32 %v4059_v6, %v2690_v3  ;;  %v4060_v15 = vld [vmem:[#allocation32_spill] sm:$0xff] }
 0x1c4   : > { %v1126_v47 = vsel %vm460_vm7, %v1120_v4, %v1112_v50  ;;  %v1122_v32 = vsel %vm460_vm7, %v1116_v1, %v1120_v4  ;;  %v1124_v2 = vsel %vm460_vm7, %v1112_v50, %v1116_v1  ;;  %v1181_v12 = vrot.slane %v1169_v18, 1 }
 0x1c5   : > { %v1132_v59 = vmul.f32 %v1126_v47, %v2774_v57  ;;  %1443 = vrot.lane.b32.xlu1 %v2436_v22, %s1826_s8  ;;  %v1130_v8 = vmul.f32 %v1124_v2, %v2774_v57  ;;  %v1131_v46 = vmul.f32 %v1122_v32, %v2774_v57  ;;  %815 = vrot.lane.b32.xlu0 %v2063_v24, %s1826_s8  ;;  %v1182_v22 = vrot.slane %v2989_v51, 1  ;;  %s790_s8 = sadd.s32 16, %s2491_s11  ;;  %s3559_s11 = sld [smem:[#allocation3 + %s823_s29]] }
 0x1c6   : > { %v1171_v28 = vmul.f32 %v4060_v15, %v2690_v3  ;;  %v3017_v45 = vmul.f32 %v2255_v7, %v2690_v3  ;;  %v3021_v4 = vmul.f32 %v2274_v19, %v2690_v3  ;;  %v310_v47 = vadd.f32 %v304_v34, %v2901_v63  ;;  %s3278_s16 = sld [smem:[#allocation3 + %s790_s8]]  ;;  %s3831_s29 = scalar_lea.hbm %s3883_s4, %s1631_s6 }
 0x1c7   : > { %v1138_v50 = vadd.f32 %v1132_v59, %v1108_v37  ;;  %v1146_v26 = vpop.permute.xlu1 %1145  ;;  %v337_v24 = vmul.f32 %v2566_v62, %v328_v42  ;;  %v1136_v18 = vadd.f32 %v1130_v8, %v1106_v54  ;;  %v1137_v1 = vadd.f32 %v1131_v46, %v1107_v33  ;;  %v1142_v32 = vpop.permute.xlu0 %1141  ;;  %v4061_v59 = vld [vmem:[#allocation16_spill] sm:$0xff] }
 0x1c8   : > { %v334_v37 = vmul.f32 %v2566_v62, %v327_v9  ;;  %v325_v2 = vsel %vm324_vm1, %v4056_v10, %v4061_v59  ;;  %v329_v7 = vsel %vm324_vm1, %v4061_v59, %v4057_v52  ;;  %v1154_v19 = vsel %vm494_vm8, %v1142_v32, %v1146_v26 }
 0x1c9   : > { %v338_v3 = vmul.f32 %v2566_v62, %v326_v11  ;;  %v339_v63 = vmul.f32 %v2566_v62, %v330_v35  ;;  %v1160_v54 = vmul.f32 %v1154_v19, %v2779_v53  ;;  %v1184_v34 = vrot.slane %v1170_v43, 1 }
 0x1ca   : > { %v1183_v10 = vsel %vm531_vm0, %v1181_v12, %v1182_v22  ;;  %v1185_v9 = vrot.slane %v3017_v45, 1  ;;  %v1187_v33 = vrot.slane %v1171_v28, 1  ;;  %v1188_v52 = vrot.slane %v3021_v4, 1 }
 0x1cb   : > { %v1228_v42 = vpop.permute.xlu1 %1227  ;;  %v311_v6 = vadd.f32 %v305_v38, %v2904_v40  ;;  %v307_v11 = vadd.f32 %v301_v16, %v2909_v31  ;;  %v308_v35 = vadd.f32 %v302_v39, %v2942_v17  ;;  %v3047_v8 = vadd.f32 %v1160_v54, %v1136_v18  ;;  %v1224_v43 = vpop.permute.xlu0 %1223  ;;  %v4062_v39 = vld [vmem:[#allocation19_spill] sm:$0xff] }
 0x1cc   : > { %v343_v46 = vadd.f32 %v337_v24, %v2944_v0  ;;  %v340_v15 = vadd.f32 %v334_v37, %v2946_v27  ;;  %v335_v12 = vmul.f32 %v2566_v62, %v325_v2  ;;  %v1237_v28 = vsel %vm256_vm2, %v1224_v43, %v1228_v42  ;;  %v4063_v24 = vld [vmem:[#allocation17_spill] sm:$0xff] }
 0x1cd   : > { %v336_v59 = vmul.f32 %v2566_v62, %v329_v7  ;;  %v3056_v19 = vstv %s3006_s15  ;;  %v1196_v40 = vadd.f32 %v1183_v10, %v2952_v49  ;;  %v1241_v31 = vmul.f32 %v1237_v28, %v2854_v44  ;;  %s1540_s15 = sshll.u32 %s3821_s22, 4  ;;  %s3833_s15 = int_to_ptr.vmem [resolvable:$true] %s1540_s15 }
 0x1ce   : > { %v344_v17 = vadd.f32 %v338_v3, %v310_v47  ;;  %v345_v38 = vadd.f32 %v339_v63, %v311_v6  ;;  %v1186_v0 = vsel %vm531_vm0, %v1184_v34, %v1185_v9  ;;  %v1189_v27 = vsel %vm531_vm0, %v1187_v33, %v1188_v52  ;;  %v4064_v33 = vld [vmem:[#allocation20_spill] sm:$0xff]  ;;  %v4065_v6 = vld [vmem:[#allocation18_spill] sm:$0xff]  ;;  %p1742_p13 = scmp.lt.s32.totalorder %s3833_s15, %s1740_s19 }
 0x1cf   : > { %v1150_v16 = vpop.permute.xlu1 %1149  ;;  %v362_v62 = vsel %vm358_vm4, %v4063_v24, %v4062_v39  ;;  %v1247_v18 = vadd.f32 %v1241_v31, %v1196_v40  ;;  %v1232_v37 = vpop.permute.xlu0 %1231  ;;  %v1197_v54 = vadd.f32 %v1186_v0, %v2954_v23  ;;  %v1198_v34 = vadd.f32 %v1189_v27, %v2948_v36  ;;  %v4066_v31 = vld [vmem:[#allocation21_spill] sm:$0xff] }
 0x1d0   : > { %v1152_v49 = vsel %vm494_vm8, %v1146_v26, %v1150_v16  ;;  %v1156_v47 = vsel %vm494_vm8, %v1150_v16, %v1142_v32  ;;  %v1235_v3 = vsel %vm256_vm2, %v1228_v42, %v1232_v37  ;;  %v1239_v63 = vsel %vm256_vm2, %v1232_v37, %v1224_v43  ;;  %v4068_v37 = vld [vmem:[#allocation25_spill] sm:$0xff] }
 0x1d1   : > { %v1161_v2 = vmul.f32 %v1152_v49, %v2779_v53  ;;  %v1162_v7 = vmul.f32 %v1156_v47, %v2779_v53  ;;  %v1242_v26 = vmul.f32 %v1235_v3, %v2854_v44  ;;  %v1243_v10 = vmul.f32 %v1239_v63, %v2854_v44  ;;  %v4070_v3 = vld [vmem:[#allocation26_spill] sm:$0xff]  ;;  %v4071_v63 = vld [vmem:[#allocation24_spill] sm:$0xff] }
 0x1d2   : > { %v371_v32 = vmul.f32 %v2575_v48, %v362_v62  ;;  %v361_v28 = vsel %vm358_vm4, %v4065_v6, %v4064_v33  ;;  %v360_v36 = vsel %vm358_vm4, %v4062_v39, %v4066_v31  ;;  %v364_v23 = vsel %vm358_vm4, %v4066_v31, %v4063_v24 }
 0x1d3   : > { %v3089_v40 = vadd.f32 %v1161_v2, %v1137_v1  ;;  %v3091_v42 = vadd.f32 %v1162_v7, %v1138_v50  ;;  %v1258_v43 = vpop.permute.xlu1 %1257  ;;  %v1248_v16 = vadd.f32 %v1242_v26, %v1197_v54  ;;  %v1249_v0 = vadd.f32 %v1243_v10, %v1198_v34  ;;  %v1254_v27 = vpop.permute.xlu0 %1253  ;;  %v4067_v1 = vld [vmem:[#allocation22_spill] sm:$0xff]  ;;  %v4069_v2 = vld [vmem:[#allocation23_spill] sm:$0xff] }
 0x1d4   : > { %v341_v62 = vadd.f32 %v335_v12, %v307_v11  ;;  %v342_v49 = vadd.f32 %v336_v59, %v308_v35  ;;  %v359_v50 = vsel %vm358_vm4, %v4064_v33, %v4067_v1  ;;  %v1267_v47 = vsel %vm290_vm3, %v1254_v27, %v1258_v43  ;;  %v4072_v10 = vld [vmem:[#allocation27_spill] sm:$0xff] }
 0x1d5   : > { %v368_v39 = vmul.f32 %v2575_v48, %v361_v28  ;;  %v363_v24 = vsel %vm358_vm4, %v4067_v1, %v4065_v6  ;;  %v396_v11 = vsel %vm392_vm5, %v4069_v2, %v4068_v37  ;;  %v1271_v35 = vmul.f32 %v1267_v47, %v2880_v29 }
 0x1d6   : > { %v377_v12 = vadd.f32 %v371_v32, %v343_v46  ;;  %v372_v59 = vmul.f32 %v2575_v48, %v360_v36  ;;  %v373_v7 = vmul.f32 %v2575_v48, %v364_v23  ;;  %v395_v54 = vsel %vm392_vm5, %v4071_v63, %v4070_v3 }
 0x1d7   : > { %v3123_v34 = vpop.permute.xlu1 %1225  ;;  %v369_v26 = vmul.f32 %v2575_v48, %v359_v50  ;;  %v394_v33 = vsel %vm392_vm5, %v4068_v37, %v4072_v10  ;;  %v398_v46 = vsel %vm392_vm5, %v4072_v10, %v4069_v2  ;;  %v1277_v32 = vadd.f32 %v1271_v35, %v1247_v18  ;;  %v1262_v6 = vpop.permute.xlu0 %1261 }
 0x1d8   : > { %v370_v28 = vmul.f32 %v2575_v48, %v363_v24  ;;  %v405_v31 = vmul.f32 %v2636_v56, %v396_v11  ;;  %v1265_v36 = vsel %vm290_vm3, %v1258_v43, %v1262_v6  ;;  %v1269_v23 = vsel %vm290_vm3, %v1262_v6, %v1254_v27  ;;  %v4073_v24 = vld [vmem:[#allocation28_spill] sm:$0xff]  ;;  %v4076_v6 = vld [vmem:[#allocation34_spill] sm:$0xff] }
 0x1d9   : > { %v374_v1 = vadd.f32 %v368_v39, %v340_v15  ;;  %v402_v50 = vmul.f32 %v2636_v56, %v395_v54  ;;  %v1272_v47 = vmul.f32 %v1265_v36, %v2880_v29  ;;  %v1273_v37 = vmul.f32 %v1269_v23, %v2880_v29  ;;  %v4078_v36 = vld [vmem:[#allocation36_spill] sm:$0xff] }
 0x1da   : > { %v378_v2 = vadd.f32 %v372_v59, %v344_v17  ;;  %v406_v18 = vmul.f32 %v2636_v56, %v394_v33  ;;  %v407_v48 = vmul.f32 %v2636_v56, %v398_v46  ;;  %v393_v43 = vsel %vm392_vm5, %v4070_v3, %v4073_v24 }
 0x1db   : > { %v1284_v11 = vpop.permute.xlu1 %1283  ;;  %v379_v35 = vadd.f32 %v373_v7, %v345_v38  ;;  %v397_v15 = vsel %vm392_vm5, %v4073_v24, %v4071_v63  ;;  %v1278_v27 = vadd.f32 %v1272_v47, %v1248_v16  ;;  %v1279_v39 = vadd.f32 %v1273_v37, %v1249_v0  ;;  %v1230_v54 = vpop.permute.xlu0 %1229  ;;  %v4079_v37 = vld [vmem:[#allocation37_spill] sm:$0xff] }
 0x1dc   : > { %v375_v17 = vadd.f32 %v369_v26, %v341_v62  ;;  %v376_v59 = vadd.f32 %v370_v28, %v342_v49  ;;  %v411_v10 = vadd.f32 %v405_v31, %v377_v12  ;;  %v1238_v33 = vsel %vm256_vm2, %v3123_v34, %v1230_v54  ;;  %v4074_v62 = vld [vmem:[#allocation33_spill] sm:$0xff]  ;;  %v4075_v49 = vld [vmem:[#allocation30_spill] sm:$0xff]  ;;  %v4077_v28 = vld [vmem:[#allocation31_spill] sm:$0xff] }
 0x1dd   : > { %v408_v46 = vadd.f32 %v402_v50, %v374_v1  ;;  %v403_v3 = vmul.f32 %v2636_v56, %v393_v43  ;;  %v1199_v38 = vadd.f32 %v1182_v22, %v3047_v8  ;;  %v1244_v7 = vmul.f32 %v1238_v33, %v2854_v44 }
 0x1de   : > { %v412_v63 = vadd.f32 %v406_v18, %v378_v2  ;;  %v413_v16 = vadd.f32 %v407_v48, %v379_v35  ;;  %v404_v0 = vmul.f32 %v2636_v56, %v397_v15  ;;  %v430_v12 = vsel %vm426_vm6, %v4075_v49, %v4074_v62 }
 0x1df   : > { %v1292_v26 = vpop.permute.xlu1 %1291  ;;  %v429_v31 = vsel %vm426_vm6, %v4077_v28, %v4076_v6  ;;  %v428_v51 = vsel %vm426_vm6, %v4074_v62, %v4078_v36  ;;  %v1250_v22 = vadd.f32 %v1244_v7, %v1199_v38  ;;  %v1288_v8 = vpop.permute.xlu0 %1287  ;;  %v432_v23 = vsel %vm426_vm6, %v4078_v36, %v4075_v49  ;;  %v4080_v7 = vld [vmem:[#allocation40_spill] sm:$0xff]  ;;  %v4081_v62 = vld [vmem:[#allocation38_spill] sm:$0xff] }
 0x1e0   : > { %v1299_v56 = vsel %vm324_vm1, %v1292_v26, %v1284_v11  ;;  %v1295_v50 = vsel %vm324_vm1, %v1288_v8, %v1292_v26  ;;  %v1297_v47 = vsel %vm324_vm1, %v1284_v11, %v1288_v8  ;;  %v427_v2 = vsel %vm426_vm6, %v4076_v6, %v4079_v37 }
 0x1e1   : > { %v1303_v1 = vmul.f32 %v1299_v56, %v2883_v30  ;;  %v431_v18 = vsel %vm426_vm6, %v4079_v37, %v4077_v28  ;;  %v1301_v48 = vmul.f32 %v1297_v47, %v2883_v30  ;;  %v1302_v24 = vmul.f32 %v1295_v50, %v2883_v30  ;;  %v4083_v47 = vld [vmem:[#allocation39_spill] sm:$0xff]  ;;  %v4084_v37 = vld [vmem:[#allocation42_spill] sm:$0xff] }
 0x1e2   : > { %v439_v43 = vmul.f32 %v2671_v55, %v430_v12  ;;  %v436_v35 = vmul.f32 %v2671_v55, %v429_v31  ;;  %v440_v11 = vmul.f32 %v2671_v55, %v428_v51  ;;  %v441_v38 = vmul.f32 %v2671_v55, %v432_v23 }
 0x1e3   : > { %v1309_v15 = vadd.f32 %v1303_v1, %v1279_v39  ;;  %v3198_v33 = vpop.permute.xlu1 %1255  ;;  %v464_v49 = vsel %vm460_vm7, %v4081_v62, %v4080_v7  ;;  %v1307_v26 = vadd.f32 %v1301_v48, %v1277_v32  ;;  %v1308_v6 = vadd.f32 %v1302_v24, %v1278_v27  ;;  %v1234_v28 = vpop.permute.xlu0 %1233 }
 0x1e4   : > { %v437_v36 = vmul.f32 %v2671_v55, %v427_v2  ;;  %v438_v12 = vmul.f32 %v2671_v55, %v431_v18  ;;  %v1236_v31 = vsel %vm256_vm2, %v1230_v54, %v1234_v28  ;;  %v1240_v39 = vsel %vm256_vm2, %v1234_v28, %v3123_v34  ;;  %v4082_v34 = vld [vmem:[#allocation41_spill] sm:$0xff]  ;;  %v4085_v2 = vld [vmem:[#allocation43_spill] sm:$0xff] }
 0x1e5   : > { %v1200_v51 = vadd.f32 %v1185_v9, %v3089_v40  ;;  %v1201_v32 = vadd.f32 %v1188_v52, %v3091_v42  ;;  %v1245_v27 = vmul.f32 %v1236_v31, %v2854_v44  ;;  %v1246_v56 = vmul.f32 %v1240_v39, %v2854_v44 }
 0x1e6   : > { %v409_v55 = vadd.f32 %v403_v3, %v375_v17  ;;  %v410_v8 = vadd.f32 %v404_v0, %v376_v59  ;;  %v445_v23 = vadd.f32 %v439_v43, %v411_v10  ;;  %v473_v54 = vmul.f32 %v2774_v57, %v464_v49 }
 0x1e7   : > { %v1314_v1 = vpop.permute.xlu1 %1313  ;;  %v442_v50 = vadd.f32 %v436_v35, %v408_v46  ;;  %v463_v45 = vsel %vm460_vm7, %v4083_v47, %v4082_v34  ;;  %v1251_v9 = vadd.f32 %v1245_v27, %v1200_v51  ;;  %v1252_v40 = vadd.f32 %v1246_v56, %v1201_v32  ;;  %v1260_v4 = vpop.permute.xlu0 %1259  ;;  %v4086_v35 = vld [vmem:[#allocation46_spill] sm:$0xff]  ;;  %v4088_v51 = vld [vmem:[#allocation47_spill] sm:$0xff]  ;;  %v4089_v32 = vld [vmem:[#allocation45_spill] sm:$0xff] }
 0x1e8   : > { %v446_v52 = vadd.f32 %v440_v11, %v412_v63  ;;  %v447_v42 = vadd.f32 %v441_v38, %v413_v16  ;;  %v462_v17 = vsel %vm460_vm7, %v4080_v7, %v4084_v37  ;;  %v1268_v59 = vsel %vm290_vm3, %v3198_v33, %v1260_v4  ;;  %v4087_v11 = vld [vmem:[#allocation44_spill] sm:$0xff] }
 0x1e9   : > { %v443_v10 = vadd.f32 %v437_v36, %v409_v55  ;;  %v444_v46 = vadd.f32 %v438_v12, %v410_v8  ;;  %v466_v3 = vsel %vm460_vm7, %v4084_v37, %v4081_v62  ;;  %v1274_v0 = vmul.f32 %v1268_v59, %v2880_v29  ;;  %v4090_v8 = vld [vmem:[#allocation48_spill] sm:$0xff] }
 0x1ea   : > { %v479_v63 = vadd.f32 %v473_v54, %v445_v23  ;;  %v470_v16 = vmul.f32 %v2774_v57, %v463_v45  ;;  %v461_v18 = vsel %vm460_vm7, %v4082_v34, %v4085_v2  ;;  %v465_v48 = vsel %vm460_vm7, %v4085_v2, %v4083_v47  ;;  %v4091_v45 = vld [vmem:[#allocation49_spill] sm:$0xff] }
 0x1eb   : > { %v1322_v24 = vpop.permute.xlu1 %1321  ;;  %v474_v43 = vmul.f32 %v2774_v57, %v462_v17  ;;  %v498_v38 = vsel %vm494_vm8, %v4087_v11, %v4086_v35  ;;  %v3252_v7 = vadd.f32 %v1274_v0, %v1250_v22  ;;  %v1318_v49 = vpop.permute.xlu0 %1317  ;;  %v475_v28 = vmul.f32 %v2774_v57, %v466_v3 }
 0x1ec   : > { %v1329_v62 = vsel %vm358_vm4, %v1322_v24, %v1314_v1  ;;  %v1325_v12 = vsel %vm358_vm4, %v1318_v49, %v1322_v24  ;;  %v1327_v31 = vsel %vm358_vm4, %v1314_v1, %v1318_v49  ;;  %v471_v39 = vmul.f32 %v2774_v57, %v461_v18 }
 0x1ed   : > { %v1333_v36 = vmul.f32 %v1329_v62, %v2893_v20  ;;  %v497_v22 = vsel %vm494_vm8, %v4089_v32, %v4088_v51  ;;  %v1331_v27 = vmul.f32 %v1327_v31, %v2893_v20  ;;  %v1332_v56 = vmul.f32 %v1325_v12, %v2893_v20 }
 0x1ee   : > { %v507_v55 = vmul.f32 %v2779_v53, %v498_v38  ;;  %v496_v23 = vsel %vm494_vm8, %v4086_v35, %v4090_v8  ;;  %v500_v54 = vsel %vm494_vm8, %v4090_v8, %v4087_v11  ;;  %v472_v47 = vmul.f32 %v2774_v57, %v465_v48 }
 0x1ef   : > { %v3280_v1 = vadd.f32 %v1333_v36, %v1309_v15  ;;  %v3282_v34 = vpop.permute.xlu1 %1285  ;;  %v495_v37 = vsel %vm494_vm8, %v4088_v51, %v4091_v45  ;;  %v3289_v17 = vadd.f32 %v1331_v27, %v1307_v26  ;;  %v3291_v59 = vadd.f32 %v1332_v56, %v1308_v6  ;;  %v1264_v3 = vpop.permute.xlu0 %1263 }
 0x1f0   : > { %v504_v0 = vmul.f32 %v2779_v53, %v497_v22  ;;  %v499_v15 = vsel %vm494_vm8, %v4091_v45, %v4089_v32  ;;  %v1266_v57 = vsel %vm290_vm3, %v1260_v4, %v1264_v3  ;;  %v1270_v2 = vsel %vm290_vm3, %v1264_v3, %v3198_v33  ;;  %v4092_v22 = vld [vmem:[#allocation52_spill] sm:$0xff] }
 0x1f1   : > { %v508_v26 = vmul.f32 %v2779_v53, %v496_v23  ;;  %v509_v6 = vmul.f32 %v2779_v53, %v500_v54  ;;  %v1275_v18 = vmul.f32 %v1266_v57, %v2880_v29  ;;  %v1276_v48 = vmul.f32 %v1270_v2, %v2880_v29  ;;  %v4098_v23 = vld [vmem:[#allocation55_spill] sm:$0xff] }
 0x1f2   : > { %v476_v24 = vadd.f32 %v470_v16, %v442_v50  ;;  %v480_v35 = vadd.f32 %v474_v43, %v446_v52  ;;  %v513_v11 = vadd.f32 %v507_v55, %v479_v63  ;;  %v505_v38 = vmul.f32 %v2779_v53, %v495_v37  ;;  %v4093_v50 = vld [vmem:[#allocation50_spill] sm:$0xff]  ;;  %v4094_v43 = vld [vmem:[#allocation53_spill] sm:$0xff] }
 0x1f3   : > { %v3308_v62 = vpop.permute.xlu1 %1343  ;;  %v481_v4 = vadd.f32 %v475_v28, %v447_v42  ;;  %v506_v49 = vmul.f32 %v2779_v53, %v499_v15  ;;  %v3311_v33 = vadd.f32 %v1275_v18, %v1251_v9  ;;  %v1282_v36 = vadd.f32 %v1276_v48, %v1252_v40  ;;  %v3313_v12 = vpop.permute.xlu0 %1289  ;;  %v4095_v42 = vld [vmem:[#allocation51_spill] sm:$0xff]  ;;  %v4096_v9 = vld [vmem:[#allocation54_spill] sm:$0xff]  ;;  %v4100_v15 = vld [vmem:[#allocation56_spill] sm:$0xff] }
 0x1f4   : > { %v477_v31 = vadd.f32 %v471_v39, %v443_v10  ;;  %v478_v51 = vadd.f32 %v472_v47, %v444_v46  ;;  %v510_v32 = vadd.f32 %v504_v0, %v476_v24  ;;  %v589_v52 = vsel %vm256_vm2, %v4093_v50, %v4092_v22  ;;  %v4099_v0 = vld [vmem:[#allocation58_spill] sm:$0xff]  ;;  %v4102_v48 = vld [vmem:[#allocation59_spill] sm:$0xff]  ;;  %v4103_v24 = vld [vmem:[#allocation57_spill] sm:$0xff] }
 0x1f5   : > { %v514_v63 = vadd.f32 %v508_v26, %v480_v35  ;;  %v515_v16 = vadd.f32 %v509_v6, %v481_v4  ;;  %v588_v53 = vsel %vm256_vm2, %v4095_v42, %v4094_v43  ;;  %v587_v40 = vsel %vm256_vm2, %v4092_v22, %v4096_v9 }
 0x1f6   : > { %v511_v10 = vadd.f32 %v505_v38, %v477_v31  ;;  %v4097_v46 = vrot.slane %v2710_v5, 1  ;;  %v591_v39 = vsel %vm256_vm2, %v4096_v9, %v4093_v50  ;;  %v3334_v27 = vstv %s3278_s16  ;;  %v4104_v38 = vld [vmem:[#allocation60_spill] sm:$0xff] }
 0x1f7   : > { %v3336_v56 = vpop.permute.xlu1 %1351  ;;  %v512_v55 = vadd.f32 %v506_v49, %v478_v51  ;;  %v598_v8 = vmul.f32 %v2854_v44, %v589_v52  ;;  %v586_v54 = vsel %vm256_vm2, %v4094_v43, %v4098_v23  ;;  %v590_v5 = vsel %vm256_vm2, %v4098_v23, %v4095_v42  ;;  %v3347_v47 = vpop.permute.xlu0 %1347  ;;  %v4109_v23 = vld [vmem:[#allocation63_spill] sm:$0xff] }
 0x1f8   : > { %v550_v28 = vadd.f32 %v4097_v46, %v513_v11  ;;  %v547_v45 = vadd.f32 %v2804_v14, %v510_v32  ;;  %v595_v37 = vmul.f32 %v2854_v44, %v588_v53  ;;  %v599_v3 = vmul.f32 %v2854_v44, %v587_v40 }
 0x1f9   : > { %v622_v57 = vsel %vm290_vm3, %v4100_v15, %v4099_v0  ;;  %v551_v2 = vadd.f32 %v536_v25, %v514_v63  ;;  %v4101_v26 = vrot.slane %v2739_v13, 1  ;;  %v600_v18 = vmul.f32 %v2854_v44, %v591_v39  ;;  %v4107_v39 = vld [vmem:[#allocation62_spill] sm:$0xff] }
 0x1fa   : > { %v621_v14 = vsel %vm290_vm3, %v4103_v24, %v4102_v48  ;;  %v596_v35 = vmul.f32 %v2854_v44, %v586_v54  ;;  %v597_v11 = vmul.f32 %v2854_v44, %v590_v5  ;;  %v620_v60 = vsel %vm290_vm3, %v4099_v0, %v4104_v38  ;;  %v4110_v0 = vld [vmem:[#allocation66_spill] sm:$0xff] }
 0x1fb   : > { %v552_v6 = vadd.f32 %v4101_v26, %v515_v16  ;;  %v624_v13 = vsel %vm290_vm3, %v4104_v38, %v4100_v15  ;;  %v3375_v25 = vpop.permute.xlu1 %1315  ;;  %v604_v4 = vadd.f32 %v598_v8, %v550_v28  ;;  %v548_v49 = vadd.f32 %v2824_v58, %v511_v10  ;;  %v3380_v44 = vpop.permute.xlu0 %1293  ;;  %v4105_v58 = vld [vmem:[#allocation61_spill] sm:$0xff]  ;;  %v4106_v28 = vld [vmem:[#allocation64_spill] sm:$0xff] }
 0x1fc   : > { %v549_v31 = vadd.f32 %v2843_v41, %v512_v55  ;;  %v631_v51 = vmul.f32 %v2880_v29, %v622_v57  ;;  %v601_v32 = vadd.f32 %v595_v37, %v547_v45  ;;  %v605_v22 = vadd.f32 %v599_v3, %v551_v2  ;;  %v4108_v8 = vld [vmem:[#allocation65_spill] sm:$0xff] }
 0x1fd   : > { %v628_v50 = vmul.f32 %v2880_v29, %v621_v14  ;;  %v1300_v52 = vsel %vm324_vm1, %v3380_v44, %v3282_v34  ;;  %v632_v63 = vmul.f32 %v2880_v29, %v620_v60  ;;  %v633_v16 = vmul.f32 %v2880_v29, %v624_v13 }
 0x1fe   : > { %v619_v41 = vsel %vm290_vm3, %v4102_v48, %v4105_v58  ;;  %v1306_v43 = vmul.f32 %v1300_v52, %v2883_v30  ;;  %v606_v42 = vadd.f32 %v600_v18, %v552_v6  ;;  %v602_v53 = vadd.f32 %v596_v35, %v548_v49  ;;  %v4111_v6 = vld [vmem:[#allocation67_spill] sm:$0xff]  ;;  %v4112_v35 = vld [vmem:[#allocation70_spill] sm:$0xff]  ;;  %v4115_v49 = vld [vmem:[#allocation69_spill] sm:$0xff] }
 0x1ff   : > { %v603_v9 = vadd.f32 %v597_v11, %v549_v31  ;;  %v623_v40 = vsel %vm290_vm3, %v4105_v58, %v4103_v24  ;;  %v3398_v10 = vpop.permute.xlu1 %1373  ;;  %v637_v46 = vadd.f32 %v631_v51, %v604_v4  ;;  %v655_v55 = vsel %vm324_vm1, %v4107_v39, %v4106_v28  ;;  %v3410_v45 = vpop.permute.xlu0 %1319  ;;  %v4113_v11 = vld [vmem:[#allocation68_spill] sm:$0xff]  ;;  %v4114_v4 = vld [vmem:[#allocation71_spill] sm:$0xff] }
 0x200   : > { %v654_v54 = vsel %vm324_vm1, %v4109_v23, %v4108_v8  ;;  %v3408_v5 = vadd.f32 %v1306_v43, %v1282_v36  ;;  %v634_v37 = vadd.f32 %v628_v50, %v601_v32  ;;  %v629_v3 = vmul.f32 %v2880_v29, %v619_v41  ;;  %v4116_v51 = vld [vmem:[#allocation72_spill] sm:$0xff] }
 0x201   : > { %v653_v15 = vsel %vm324_vm1, %v4106_v28, %v4110_v0  ;;  %v657_v57 = vsel %vm324_vm1, %v4110_v0, %v4107_v39  ;;  %v638_v2 = vadd.f32 %v632_v63, %v605_v22  ;;  %v639_v26 = vadd.f32 %v633_v16, %v606_v42  ;;  %v4117_v63 = vld [vmem:[#allocation73_spill] sm:$0xff]  ;;  %v4118_v42 = vld [vmem:[#allocation76_spill] sm:$0xff] }
 0x202   : > { %v630_v36 = vmul.f32 %v2880_v29, %v623_v40  ;;  %v652_v18 = vsel %vm324_vm1, %v4108_v8, %v4111_v6  ;;  %v664_v48 = vmul.f32 %v2883_v30, %v655_v55  ;;  %v661_v24 = vmul.f32 %v2883_v30, %v654_v54  ;;  %v4119_v40 = vld [vmem:[#allocation74_spill] sm:$0xff]  ;;  %v4120_v39 = vld [vmem:[#allocation77_spill] sm:$0xff]  ;;  %v4121_v55 = vld [vmem:[#allocation75_spill] sm:$0xff] }
 0x203   : > { %v656_v14 = vsel %vm324_vm1, %v4111_v6, %v4109_v23  ;;  %v688_v38 = vsel %vm358_vm4, %v4113_v11, %v4112_v35  ;;  %v3436_v29 = vpop.permute.xlu1 %1381  ;;  %v665_v60 = vmul.f32 %v2883_v30, %v653_v15  ;;  %v666_v13 = vmul.f32 %v2883_v30, %v657_v57  ;;  %v3448_v22 = vpop.permute.xlu0 %1377 }
 0x204   : > { %v687_v31 = vsel %vm358_vm4, %v4115_v49, %v4114_v4  ;;  %v686_v32 = vsel %vm358_vm4, %v4112_v35, %v4116_v51  ;;  %v662_v50 = vmul.f32 %v2883_v30, %v652_v18  ;;  %v690_v52 = vsel %vm358_vm4, %v4116_v51, %v4113_v11 }
 0x205   : > { %v685_v16 = vsel %vm358_vm4, %v4114_v4, %v4117_v63  ;;  %v689_v58 = vsel %vm358_vm4, %v4117_v63, %v4115_v49  ;;  %v663_v41 = vmul.f32 %v2883_v30, %v656_v14  ;;  %v697_v43 = vmul.f32 %v2893_v20, %v688_v38 }
 0x206   : > { %v721_v28 = vsel %vm392_vm5, %v4119_v40, %v4118_v42  ;;  %v720_v8 = vsel %vm392_vm5, %v4121_v55, %v4120_v39  ;;  %v635_v23 = vadd.f32 %v629_v3, %v602_v53  ;;  %v636_v54 = vadd.f32 %v630_v36, %v603_v9 }
 0x207   : > { %v694_v0 = vmul.f32 %v2893_v20, %v687_v31  ;;  %v698_v15 = vmul.f32 %v2893_v20, %v686_v32  ;;  %v3475_v57 = vpop.permute.xlu1 %1345  ;;  %v670_v6 = vadd.f32 %v664_v48, %v637_v46  ;;  %v699_v18 = vmul.f32 %v2893_v20, %v690_v52  ;;  %v3480_v11 = vpop.permute.xlu0 %1323  ;;  %v4122_v48 = vld [vmem:[#allocation78_spill] sm:$0xff] }
 0x208   : > { %v695_v14 = vmul.f32 %v2893_v20, %v685_v16  ;;  %v696_v35 = vmul.f32 %v2893_v20, %v689_v58  ;;  %v667_v38 = vadd.f32 %v661_v24, %v634_v37  ;;  %v671_v4 = vadd.f32 %v665_v60, %v638_v2 }
 0x209   : > { %v730_v53 = vmul.f32 %v2966_v21, %v721_v28  ;;  %v727_v9 = vmul.f32 %v2966_v21, %v720_v8  ;;  %v672_v3 = vadd.f32 %v666_v13, %v639_v26  ;;  %v668_v36 = vadd.f32 %v662_v50, %v635_v23  ;;  %v4123_v13 = vld [vmem:[#allocation79_spill] sm:$0xff] }
 0x20a   : > { %v669_v49 = vadd.f32 %v663_v41, %v636_v54  ;;  %v703_v31 = vadd.f32 %v697_v43, %v670_v6  ;;  %v700_v51 = vadd.f32 %v694_v0, %v667_v38  ;;  %v704_v46 = vadd.f32 %v698_v15, %v671_v4  ;;  %v4124_v41 = vld [vmem:[#allocation82_spill] sm:$0xff]  ;;  %v4125_v43 = vld [vmem:[#allocation80_spill] sm:$0xff]  ;;  %v4126_v8 = vld [vmem:[#allocation83_spill] sm:$0xff] }
 0x20b   : > { %v719_v32 = vsel %vm392_vm5, %v4118_v42, %v4122_v48  ;;  %v723_v37 = vsel %vm392_vm5, %v4122_v48, %v4119_v40  ;;  %v3492_v2 = vpop.permute.xlu1 %1403  ;;  %v705_v24 = vadd.f32 %v699_v18, %v672_v3  ;;  %v701_v60 = vadd.f32 %v695_v14, %v668_v36  ;;  %v3498_v52 = vpop.permute.xlu0 %1349  ;;  %v4128_v54 = vld [vmem:[#allocation84_spill] sm:$0xff]  ;;  %v4129_v6 = vld [vmem:[#allocation85_spill] sm:$0xff] }
 0x20c   : > { %v702_v26 = vadd.f32 %v696_v35, %v669_v49  ;;  %v718_v50 = vsel %vm392_vm5, %v4120_v39, %v4123_v13  ;;  %v736_v63 = vadd.f32 %v730_v53, %v703_v31  ;;  %v733_v16 = vadd.f32 %v727_v9, %v700_v51  ;;  %v4127_v39 = vld [vmem:[#allocation81_spill] sm:$0xff]  ;;  %v4130_v53 = vld [vmem:[#allocation88_spill] sm:$0xff]  ;;  %v4131_v9 = vld [vmem:[#allocation86_spill] sm:$0xff] }
 0x20d   : > { %v722_v58 = vsel %vm392_vm5, %v4123_v13, %v4121_v55  ;;  %v754_v42 = vsel %vm426_vm6, %v4125_v43, %v4124_v41  ;;  %v731_v40 = vmul.f32 %v2966_v21, %v719_v32  ;;  %v732_v28 = vmul.f32 %v2966_v21, %v723_v37  ;;  %v4132_v36 = vld [vmem:[#allocation89_spill] sm:$0xff]  ;;  %v4133_v49 = vld [vmem:[#allocation87_spill] sm:$0xff]  ;;  %v4134_v37 = vld [vmem:[#allocation90_spill] sm:$0xff] }
 0x20e   : > { %v753_v23 = vsel %vm426_vm6, %v4127_v39, %v4126_v8  ;;  %v752_v0 = vsel %vm426_vm6, %v4124_v41, %v4128_v54  ;;  %v728_v55 = vmul.f32 %v2966_v21, %v718_v50  ;;  %v756_v15 = vsel %vm426_vm6, %v4128_v54, %v4125_v43 }
 0x20f   : > { %v751_v18 = vsel %vm426_vm6, %v4126_v8, %v4129_v6  ;;  %v755_v14 = vsel %vm426_vm6, %v4129_v6, %v4127_v39  ;;  %v3531_v35 = vpop.permute.xlu1 %1411  ;;  %v729_v38 = vmul.f32 %v2966_v21, %v722_v58  ;;  %v763_v4 = vmul.f32 %v3056_v19, %v754_v42  ;;  %v3544_v51 = vpop.permute.xlu0 %1407 }
 0x210   : > { %v787_v3 = vsel %vm460_vm7, %v4131_v9, %v4130_v53  ;;  %v786_v31 = vsel %vm460_vm7, %v4133_v49, %v4132_v36  ;;  %v760_v48 = vmul.f32 %v3056_v19, %v753_v23  ;;  %v764_v32 = vmul.f32 %v3056_v19, %v752_v0 }
 0x211   : > { %v784_v13 = vsel %vm460_vm7, %v4132_v36, %v4134_v37  ;;  %v788_v50 = vsel %vm460_vm7, %v4134_v37, %v4133_v49  ;;  %v737_v58 = vadd.f32 %v731_v40, %v704_v46  ;;  %v765_v41 = vmul.f32 %v3056_v19, %v756_v15 }
 0x212   : > { %v761_v43 = vmul.f32 %v3056_v19, %v751_v18  ;;  %v762_v42 = vmul.f32 %v3056_v19, %v755_v14  ;;  %v738_v8 = vadd.f32 %v732_v28, %v705_v24  ;;  %v734_v39 = vadd.f32 %v728_v55, %v701_v60 }
 0x213   : > { %v796_v23 = vmul.f32 %v3334_v27, %v787_v3  ;;  %v793_v54 = vmul.f32 %v3334_v27, %v786_v31  ;;  %v3563_v0 = vpop.permute.xlu1 %1375  ;;  %v735_v6 = vadd.f32 %v729_v38, %v702_v26  ;;  %v794_v36 = vmul.f32 %v3334_v27, %v784_v13  ;;  %v3567_v40 = vpop.permute.xlu0 %1353 }
 0x214   : > { %v795_v46 = vmul.f32 %v3334_v27, %v788_v50  ;;  %v4135_v15 = vlaneseq  ;;  %v769_v24 = vadd.f32 %v763_v4, %v736_v63  ;;  %v766_v60 = vadd.f32 %v760_v48, %v733_v16 }
 0x215   : > { %v3575_v28 = vadd.f32 %v764_v32, %v737_v58  ;;  %v3577_v55 = vadd.f32 %v765_v41, %v738_v8  ;;  %v767_v14 = vadd.f32 %v761_v43, %v734_v39  ;;  %v768_v3 = vadd.f32 %v762_v42, %v735_v6 }
 0x216   : > { %v3573_v18 = vshrl.u32 %v4135_v15, 7  ;;  %v1357_v26 = vsel %vm392_vm5, %v3308_v62, %v3347_v47  ;;  %v3583_v38 = vadd.f32 %v796_v23, %v769_v24  ;;  %v3585_v49 = vadd.f32 %v793_v54, %v766_v60 }
 0x217   : > { %v1298_v63 = vsel %vm324_vm1, %v3282_v34, %v3313_v12  ;;  %v1359_v16 = vsel %vm392_vm5, %v3336_v56, %v3308_v62  ;;  %v806_v4 = vpop.permute.xlu1 %805  ;;  %v3595_v31 = vadd.f32 %v794_v36, %v767_v14  ;;  %v3597_v48 = vadd.f32 %v795_v46, %v768_v3  ;;  %v3603_v37 = vpop.permute.xlu0 %1379 }
 0x218   : > { %v1387_v32 = vsel %vm426_vm6, %v3398_v10, %v3448_v22  ;;  %v848_v34 = vsub.s32 0, %v3573_v18  ;;  %v1355_v13 = vsel %vm392_vm5, %v3347_v47, %v3336_v56  ;;  %v1361_v62 = vmul.f32 %v1357_v26, %v2966_v21  ;;  %v3625_v56 = vld [vmem:[%s3881_s2] sm:$0x7] }
 0x219   : > { %v1296_v50 = vsel %vm324_vm1, %v3313_v12, %v3380_v44  ;;  %v852_v58 = vsub.s32 1, %v3573_v18  ;;  %v1304_v41 = vmul.f32 %v1298_v63, %v2883_v30  ;;  %v1363_v43 = vmul.f32 %v1359_v16, %v2966_v21 }
 0x21a   : > { %v1417_v42 = vsel %vm460_vm7, %v3492_v2, %v3544_v51  ;;  %v3628_v47 = vstv %s3559_s11  ;;  %v1328_v12 = vsel %vm358_vm4, %v3375_v25, %v3410_v45  ;;  %v1389_v44 = vsel %vm426_vm6, %v3436_v29, %v3398_v10  ;;  %s1527_s11 = scalar_lea.sflag [#allocation7], %s1923_s18 }
 0x21b   : > { %v1391_v8 = vmul.f32 %v1387_v32, %v3056_v19  ;;  %v856_v39 = vsub.s32 2, %v3573_v18  ;;  %v814_v23 = vpop.permute.xlu1 %813  ;;  %v1362_v54 = vmul.f32 %v1355_v13, %v2966_v21  ;;  %v1305_v6 = vmul.f32 %v1296_v50, %v2883_v30  ;;  %v810_v15 = vpop.permute.xlu0 %809 }
 0x21c   : > { %v1385_v36 = vsel %vm426_vm6, %v3448_v22, %v3436_v29  ;;  %v3647_v46 = vstv %s3570_s17  ;;  %v1367_v24 = vadd.f32 %v1361_v62, %v3289_v17  ;;  %v1421_v10 = vmul.f32 %v1417_v42, %v3334_v27  ;;  %s1735_s17 = scalar_lea.vmem %s3833_s15, 32 }
 0x21d   : > { %v3652_v60 = vrot.slane %v3625_v56, %v848_v34  ;;  %v3655_v14 = vrot.slane %v3625_v56, %v852_v58  ;;  %v1310_v30 = vadd.f32 %v1304_v41, %v3252_v7  ;;  %v1369_v3 = vadd.f32 %v1363_v43, %v3280_v1  ;;  %p1736_p10 = scmp.ne.s32.totalorder %s3833_s15, %s1735_s17  ;;  %p1743_p0 = scmp.lt.s32.totalorder %s1741_s20, %s1735_s17 }
 0x21e   : > { %v1334_v26 = vmul.f32 %v1328_v12, %v2893_v20  ;;  %v1393_v29 = vmul.f32 %v1389_v44, %v3056_v19  ;;  %v1392_v22 = vmul.f32 %v1385_v36, %v3056_v19  ;;  %v1397_v63 = vadd.f32 %v1391_v8, %v1367_v24 }
 0x21f   : > { %v817_v17 = vsel %vm494_vm8, %v810_v15, %v814_v23  ;;  %v819_v16 = vsel %vm494_vm8, %v806_v4, %v810_v15  ;;  %v1438_v32 = vpop.permute.xlu1 %1437  ;;  %v1368_v34 = vadd.f32 %v1362_v54, %v3291_v59  ;;  %v1311_v7 = vadd.f32 %v1305_v6, %v3311_v33  ;;  %v1434_v62 = vpop.permute.xlu0 %1433  ;;  %p1737_p11 = pnand %p1736_p10, %p1899_p1  ;;  %p1744_p2 = por %p1743_p0, %p1742_p13 }
 0x220   : > { %v1326_v1 = vsel %vm358_vm4, %v3410_v45, %v3480_v11  ;;  %v1415_v13 = vsel %vm460_vm7, %v3544_v51, %v3531_v35  ;;  %v1330_v50 = vsel %vm358_vm4, %v3480_v11, %v3375_v25  ;;  %v1419_v59 = vsel %vm460_vm7, %v3531_v35, %v3492_v2 }
 0x221   : > { %v1427_v33 = vadd.f32 %v1421_v10, %v1397_v63  ;;  %v1447_v45 = vsel %vm494_vm8, %v1434_v62, %v1438_v32  ;;  %v821_v58 = vsel %vm494_vm8, %v814_v23, %v806_v4  ;;  %v826_v51 = vmul.f32 %v3628_v47, %v819_v16  ;;  %p1738_p12 = pneg %p1737_p11 }
 0x222   : > { %v827_v41 = vmul.f32 %v3628_v47, %v817_v17  ;;  %v1451_v43 = vmul.f32 %v1447_v45, %v3628_v47  ;;  %v1340_v42 = vadd.f32 %v1334_v26, %v1310_v30  ;;  %v1399_v25 = vadd.f32 %v1393_v29, %v1369_v3 }
 0x223   : > { %v1398_v11 = vadd.f32 %v1392_v22, %v1368_v34  ;;  %v1422_v12 = vmul.f32 %v1415_v13, %v3334_v27  ;;  %v1384_v44 = vpop.permute.xlu1 %1383  ;;  %v1335_v2 = vmul.f32 %v1326_v1, %v2893_v20  ;;  %v1358_v35 = vsel %vm392_vm5, %v3475_v57, %v3498_v52  ;;  %v1442_v23 = vpop.permute.xlu0 %1441  ;;  %p1745_p3 = pnand %p1744_p2, %p1738_p12 }
 0x224   : > { %v1423_v4 = vmul.f32 %v1419_v59, %v3334_v27  ;;  %v1457_v8 = vadd.f32 %v1451_v43, %v1427_v33  ;;  %v1336_v54 = vmul.f32 %v1330_v50, %v2893_v20  ;;  %v1356_v6 = vsel %vm392_vm5, %v3498_v52, %v3567_v40 }
 0x225   : > { %v828_v36 = vmul.f32 %v3628_v47, %v821_v58  ;;  %v1445_v15 = vsel %vm494_vm8, %v1438_v32, %v1442_v23  ;;  %v1360_v24 = vsel %vm392_vm5, %v3567_v40, %v3475_v57  ;;  %v1388_v20 = vsel %vm426_vm6, %v3563_v0, %v3603_v37 }
 0x226   : > { %v832_v10 = vadd.f32 %v826_v51, %v3585_v49  ;;  %v833_v30 = vadd.f32 %v827_v41, %v3595_v31  ;;  %v1364_v52 = vmul.f32 %v1358_v35, %v2966_v21  ;;  %v1428_v3 = vadd.f32 %v1422_v12, %v1398_v11 }
 0x227   : > { %v1449_v26 = vsel %vm494_vm8, %v1442_v23, %v1434_v62  ;;  %v1452_v29 = vmul.f32 %v1445_v15, %v3628_v47  ;;  %v1410_v22 = vpop.permute.xlu1 %1409  ;;  %v1429_v63 = vadd.f32 %v1423_v4, %v1399_v25  ;;  %v1365_v57 = vmul.f32 %v1356_v6, %v2966_v21  ;;  %v1406_v16 = vpop.permute.xlu0 %1405 }
 0x228   : > { %v1463_v40 = vsub.f32 %v1457_v8, %v3647_v46  ;;  %v1453_v17 = vmul.f32 %v1449_v26, %v3628_v47  ;;  %v1366_v49 = vmul.f32 %v1360_v24, %v2966_v21  ;;  %v1394_v31 = vmul.f32 %v1388_v20, %v3056_v19 }
 0x229   : > { %v834_v32 = vadd.f32 %v828_v36, %v3597_v48  ;;  %v1458_v34 = vadd.f32 %v1452_v29, %v1428_v3  ;;  %v1341_v1 = vadd.f32 %v1335_v2, %v1311_v7  ;;  %v839_v13 = vsub.f32 %v832_v10, %v3647_v46 }
 0x22a   : > { %v840_v62 = vsub.f32 %v833_v30, %v3647_v46  ;;  %v1459_v50 = vadd.f32 %v1453_v17, %v1429_v63  ;;  %v1342_v59 = vadd.f32 %v1336_v54, %v3408_v5  ;;  %v1370_v33 = vadd.f32 %v1364_v52, %v1340_v42 }
 0x22b   : > { %v3732_v45 = vrot.slane %v3625_v56, %v856_v39  ;;  %v1464_v21 = vsub.f32 %v1458_v34, %v3647_v46  ;;  %v3735_v58 = vpop.permute.xlu1 %807  ;;  %v1371_v48 = vadd.f32 %v1365_v57, %v1341_v1  ;;  %v1469_v7 = vmul.f32 %v1463_v40, %v3652_v60  ;;  %v783_v5 = vpop.permute.xlu0 %782 }
 0x22c   : > { %v1386_v51 = vsel %vm426_vm6, %v3603_v37, %v1384_v44  ;;  %v1465_v41 = vsub.f32 %v1459_v50, %v3647_v46  ;;  %v1372_v43 = vadd.f32 %v1366_v49, %v1342_v59  ;;  %v1400_v42 = vadd.f32 %v1394_v31, %v1370_v33 }
 0x22d   : > { %v841_v25 = vsub.f32 %v834_v32, %v3647_v46  ;;  %v1470_v56 = vmul.f32 %v1464_v21, %v3655_v14  ;;  %v861_v39 = vmul.f32 %v3652_v60, %v839_v13  ;;  %v862_v11 = vmul.f32 %v3655_v14, %v840_v62 }
 0x22e   : > { %v1390_v12 = vsel %vm426_vm6, %v1384_v44, %v3563_v0  ;;  %v1471_v2 = vmul.f32 %v1465_v41, %v3732_v45  ;;  %v1395_v37 = vmul.f32 %v1386_v51, %v3056_v19  ;;  %v1418_v8 = vsel %vm460_vm7, %v1406_v16, %v1410_v22 }
 0x22f   : > { %v1475_v35 = vadd.f32 %v1470_v56, %v1469_v7  ;;  %v1494_v4 = vmul.f32 %v1470_v56, %v1470_v56  ;;  %v1414_v23 = vpop.permute.xlu1 %1413  ;;  %v1493_v54 = vmul.f32 %v1469_v7, %v1469_v7  ;;  %v785_v6 = vsel %vm460_vm7, %v4130_v53, %v783_v5  ;;  %v812_v44 = vpop.permute.xlu0 %811 }
 0x230   : > { %v789_v36 = vsel %vm460_vm7, %v783_v5, %v4131_v9  ;;  %v1416_v0 = vsel %vm460_vm7, %v1410_v22, %v1414_v23  ;;  %v1396_v15 = vmul.f32 %v1390_v12, %v3056_v19  ;;  %v1420_v24 = vsel %vm460_vm7, %v1414_v23, %v1406_v16 }
 0x231   : > { %v820_v20 = vsel %vm494_vm8, %v3735_v58, %v812_v44  ;;  %v3767_v10 = vadd.f32 %v1475_v35, %v1471_v2  ;;  %v1495_v53 = vmul.f32 %v1471_v2, %v1471_v2  ;;  %v1424_v30 = vmul.f32 %v1418_v8, %v3334_v27 }
 0x232   : > { %v829_v9 = vmul.f32 %v3628_v47, %v820_v20  ;;  %v1499_v52 = vadd.f32 %v1494_v4, %v1493_v54  ;;  %v797_v3 = vmul.f32 %v3334_v27, %v785_v6  ;;  %v798_v19 = vmul.f32 %v3334_v27, %v789_v36 }
 0x233   : > { %v1425_v26 = vmul.f32 %v1416_v0, %v3334_v27  ;;  %v1426_v29 = vmul.f32 %v1420_v24, %v3334_v27  ;;  %v1440_v22 = vpop.permute.xlu1 %1439  ;;  %v863_v63 = vmul.f32 %v3732_v45, %v841_v25  ;;  %v867_v57 = vadd.f32 %v862_v11, %v861_v39  ;;  %v1436_v17 = vpop.permute.xlu0 %1435 }
 0x234   : > { %v835_v40 = vadd.f32 %v829_v9, %v3583_v38  ;;  %v1500_v16 = vadd.f32 %v1499_v52, %v1495_v53  ;;  %v886_v49 = vmul.f32 %v861_v39, %v861_v39  ;;  %v1401_v31 = vadd.f32 %v1395_v37, %v1371_v48 }
 0x235   : > { %v1402_v32 = vadd.f32 %v1396_v15, %v1372_v43  ;;  %v1448_v34 = vsel %vm494_vm8, %v1436_v17, %v1440_v22  ;;  %v887_v1 = vmul.f32 %v862_v11, %v862_v11  ;;  %v1430_v13 = vadd.f32 %v1424_v30, %v1400_v42 }
 0x236   : > { %v842_v62 = vsub.f32 %v835_v40, %v3647_v46  ;;  %v1454_v27 = vmul.f32 %v1448_v34, %v3628_v47  ;;  %v803_v50 = vadd.f32 %v797_v3, %v3575_v28  ;;  %v804_v59 = vadd.f32 %v798_v19, %v3577_v55 }
 0x237   : > { %v1431_v33 = vadd.f32 %v1425_v26, %v1401_v31  ;;  %v1432_v38 = vadd.f32 %v1426_v29, %v1402_v32  ;;  %v1444_v21 = vpop.permute.xlu1 %1443  ;;  %v816_v5 = vpop.permute.xlu0 %815  ;;  %v892_v37 = vadd.f32 %v887_v1, %v886_v49  ;;  %v888_v35 = vmul.f32 %v863_v63, %v863_v63 }
 0x238   : > { %v864_v7 = vmul.f32 %v3652_v60, %v842_v62  ;;  %v1460_v48 = vadd.f32 %v1454_v27, %v1430_v13  ;;  %v1446_v51 = vsel %vm494_vm8, %v1440_v22, %v1444_v21  ;;  %v1450_v41 = vsel %vm494_vm8, %v1444_v21, %v1436_v17 }
 0x239   : > { %v1455_v43 = vmul.f32 %v1446_v51, %v3628_v47  ;;  %v1456_v42 = vmul.f32 %v1450_v41, %v3628_v47  ;;  %v818_v28 = vsel %vm494_vm8, %v812_v44, %v816_v5  ;;  %v822_v55 = vsel %vm494_vm8, %v816_v5, %v3735_v58 }
 0x23a   : > { %v889_v25 = vmul.f32 %v864_v7, %v864_v7  ;;  %v1466_v56 = vsub.f32 %v1460_v48, %v3647_v46  ;;  %v830_v39 = vmul.f32 %v3628_v47, %v818_v28  ;;  %v831_v11 = vmul.f32 %v3628_v47, %v822_v55 }
 0x23b   : > { %v1461_v12 = vadd.f32 %v1455_v43, %v1431_v33  ;;  %v1462_v2 = vadd.f32 %v1456_v42, %v1432_v38  ;;  %v868_v58 = vadd.f32 %v867_v57, %v863_v63  ;;  %v870_v6 = vsel %vm869_vm9, %v864_v7, 0.0 }
 0x23c   : > { %v1472_v4 = vmul.f32 %v1466_v56, %v3652_v60  ;;  %v836_v8 = vadd.f32 %v830_v39, %v803_v50  ;;  %v837_v23 = vadd.f32 %v831_v11, %v804_v59  ;;  %v894_v44 = vsel %vm869_vm9, %v889_v25, 0.0 }
 0x23d   : > { %v1467_v54 = vsub.f32 %v1461_v12, %v3647_v46  ;;  %v1468_v61 = vsub.f32 %v1462_v2, %v3647_v46  ;;  %v893_v24 = vadd.f32 %v892_v37, %v888_v35  ;;  %v871_v3 = vadd.f32 %v870_v6, %v868_v58 }
 0x23e   : > { %v1496_v36 = vmul.f32 %v1472_v4, %v1472_v4  ;;  %v843_v0 = vsub.f32 %v836_v8, %v3647_v46  ;;  %v844_v47 = vsub.f32 %v837_v23, %v3647_v46  ;;  %v1477_v20 = vsel %vm869_vm9, %v1472_v4, 0.0 }
 0x23f   : > { %v1473_v15 = vmul.f32 %v1467_v54, %v3655_v14  ;;  %v1474_v60 = vmul.f32 %v1468_v61, %v3732_v45  ;;  %v1478_v9 = vadd.f32 %v1477_v20, %v3767_v10  ;;  %v895_v19 = vadd.f32 %v894_v44, %v893_v24 }
 0x240   : > { %v865_v53 = vmul.f32 %v3655_v14, %v843_v0  ;;  %v866_v30 = vmul.f32 %v3732_v45, %v844_v47  ;;  %v1501_v52 = vsel %vm869_vm9, %v1496_v36, 0.0  ;;  %v1827_v59 = vmov 0.0  }
 0x241   : > { %v1479_v46 = vsel %vm869_vm9, %v1473_v15, 0.0  ;;  %v1497_v26 = vmul.f32 %v1473_v15, %v1473_v15  ;;  %v1498_v57 = vmul.f32 %v1474_v60, %v1474_v60  ;;  %v1502_v49 = vadd.f32 %v1501_v52, %v1500_v16  ;;  %218 = vst [vmem:[%s3821_s22] sm:$0x3] %v1827_v59 }
 0x242   : > { %v872_v29 = vsel %vm869_vm9, %v865_v53, 0.0  ;;  %v890_v22 = vmul.f32 %v865_v53, %v865_v53  ;;  %v891_v63 = vmul.f32 %v866_v30, %v866_v30  ;;  %v1480_v17 = vadd.f32 %v1479_v46, %v1478_v9 }
 0x243   : > { %v873_v40 = vadd.f32 %v872_v29, %v871_v3  ;;  %v1503_v14 = vsel %vm869_vm9, %v1497_v26, 0.0  ;;  %v874_v45 = vsel %vm869_vm9, %v866_v30, 0.0  ;;  %v1481_v31 = vsel %vm869_vm9, %v1474_v60, 0.0 }
 0x244   : > { %v896_v10 = vsel %vm869_vm9, %v890_v22, 0.0  ;;  %v1482_v1 = vadd.f32 %v1481_v31, %v1480_v17  ;;  %v1504_v13 = vadd.f32 %v1503_v14, %v1502_v49  ;;  %v898_v62 = vsel %vm869_vm9, %v891_v63, 0.0 }
 0x245   : > { %v875_v32 = vadd.f32 %v874_v45, %v873_v40  ;;  %v897_v34 = vadd.f32 %v896_v10, %v895_v19  ;;  %v1505_v27 = vsel %vm869_vm9, %v1498_v57, 0.0  ;;  %vm1520_vm10 = vcmp.eq.s32.totalorder %v3573_v18, 0 }
 0x246   : > { %v1506_v16 = vadd.f32 %v1505_v27, %v1504_v13 }
 0x247   : > { %876 = vadd.xlane.f32.xlu0 %v875_v32  ;;  %v899_v50 = vadd.f32 %v898_v62, %v897_v34 }
 0x248   : > { %v1519_v0 = vld [vmem:[%s3821_s22] sm:$0x3] }
 0x249   : > { %900 = vadd.xlane.f32.xlu1 %v899_v50 }
 0x24b   : > { %1483 = vadd.xlane.f32.xlu0 %v1482_v1 }
 0x24f   : > { %1507 = vadd.xlane.f32.xlu0 %v1506_v16 }
 0x2d4   : > { %v877_v33 = vpop.xlane.xlu0 %876 }
 0x2d5   : > { %v878_v38 = vrot.slane %v877_v33, 4 }
 0x2d6   : > { %v901_v21 = vpop.xlane.xlu1 %900 }
 0x2d7   : > { %v879_v7 = vadd.f32 %v878_v38, %v877_v33  ;;  %v902_v48 = vrot.slane %v901_v21, 4 }
 0x2d8   : > { %v1484_v51 = vpop.xlane.xlu0 %1483 }
 0x2d9   : > { %v880_v41 = vrot.slane %v879_v7, 2  ;;  %v903_v5 = vadd.f32 %v902_v48, %v901_v21  ;;  %v1485_v43 = vrot.slane %v1484_v51, 4 }
 0x2db   : > { %v904_v42 = vrot.slane %v903_v5, 2  ;;  %v1486_v28 = vadd.f32 %v1485_v43, %v1484_v51  ;;  %v881_v55 = vadd.f32 %v880_v41, %v879_v7 }
 0x2dc   : > { %v1508_v25 = vpop.xlane.xlu0 %1507 }
 0x2dd   : > { %v905_v56 = vadd.f32 %v904_v42, %v903_v5  ;;  %v1487_v39 = vrot.slane %v1486_v28, 2  ;;  %v1509_v11 = vrot.slane %v1508_v25, 4  ;;  %v882_v12 = vrot.slane %v881_v55, 1 }
 0x2df   : > { %v1510_v2 = vadd.f32 %v1509_v11, %v1508_v25  ;;  %v883_v37 = vadd.f32 %v882_v12, %v881_v55  ;;  %v906_v35 = vrot.slane %v905_v56, 1  ;;  %v1488_v4 = vadd.f32 %v1487_v39, %v1486_v28 }
 0x2e1   : > { %v1511_v8 = vrot.slane %v1510_v2, 2  ;;  %1637 = vpush %v883_v37  ;;  %v907_v23 = vadd.f32 %v906_v35, %v905_v56  ;;  %v1489_v54 = vrot.slane %v1488_v4, 1 }
 0x2e3   : > { %v1512_v61 = vadd.f32 %v1511_v8, %v1510_v2  ;;  %1639 = vpush %v907_v23  ;;  %v1490_v58 = vadd.f32 %v1489_v54, %v1488_v4 }
 0x2e5   : > { %1641 = vpush %v1490_v58  ;;  %v1513_v6 = vrot.slane %v1512_v61, 1 }
 0x2e7   : > { %v1514_v36 = vadd.f32 %v1513_v6, %v1512_v61 }
 0x2e9   : > { %1643 = vpush %v1514_v36 }
 0x312   : > { %s1638_s23 = spop %1637 }
 0x314   : > { %s1640_s12 = spop %1639 }
 0x316   : > { %s1642_s0 = spop %1641 }
 0x317   : > { %s1492_s13 = sadd.f32 %s1642_s0, %s1638_s23 }
 0x319   : > { %v1521_v47 = vstv %s1492_s13 }
 0x31a   : > { %s1644_s30 = spop %1643 }
 0x31b   : > { %s1516_s14 = sadd.f32 %s1644_s30, %s1640_s12 }
 0x31d   : > { %v1522_v44 = vstv %s1516_s14 }
 0x31e   : > { %v1523_v15 = vsel %vm1520_vm10, %v1521_v47, %v1522_v44 }
 0x31f   : > { %v1524_v24 = vadd.f32 %v1523_v15, %v1519_v0 }
 0x321   : > { %1525 = vst [vmem:[%s3821_s22] sm:$0x3] %v1524_v24 }
 0x322   : > { %1748 = shalt.err (!%p1745_p3)
}
 0x323   : > { %s1749_s18 = scalar_lea.hbm %s3831_s29, 32  ;;  %s1753_s23 = scalar_lea.hbm %s3883_s4, 128 }
 0x324   : > { %p1750_p4 = scmp.ne.s32.totalorder %s3831_s29, %s1749_s18  ;;  %p1754_p8 = scmp.lt.u32.totalorder %s3831_s29, %s3883_s4 }
 0x325   : > { %p1755_p9 = scmp.lt.u32.totalorder %s1753_s23, %s1749_s18  ;;  %p1757_p11 = scmp.lt.u32.totalorder %s1749_s18, %s3831_s29 }
 0x326   : > { %p1751_p6 = pnand %p1750_p4, %p1899_p1 }
 0x327   : > { %p1756_p10 = por %p1755_p9, %p1754_p8 }
 0x328   : > { %p1752_p7 = pneg %p1751_p6 }
 0x329   : > { %p1758_p12 = por %p1757_p11, %p1756_p10 }
 0x32b   : > { %p1759_p13 = pnand %p1758_p12, %p1752_p7 }
 0x32d   : > { %1762 = shalt.err (!%p1759_p13)
}
 0x32e   : > { %1645 = dma.vmem_to_hbm [thread:$0]  (%p1899_p1), %s3833_s15, 32, %s3831_s29, %s1527_s11  }
 0x32f PF: > { %p1651_p0 = scmp.ge.s32.totalorder %s1815_s28, 2  ;;  %s1552_s13 = sand.u32 1, %s1795_s1  }
 0x330   : > { %s1553_s30 = scalar_lea.sflag [#allocation7], %s1552_s13 }
 0x331   : > { %p1648_p2 = pnand %p1651_p0, %p1910_p5 }
 0x333   : > { %1790 = dma.done.wait (!%p1648_p2), %s1553_s30, 32  }
 0x334   : > { %1792 = vsyncadd (!%p1648_p2), %s1553_s30, 4294967264  ;;  %s27_s28 = sadd.s32 1, %s1815_s28   ;;  %s4136_s1 = smov %s1799_s24 }
 0x335   : > { %p24_p3 = scmp.ge.s32.totalorder %s27_s28, 6   ;;  %s4137_s24 = smov %s1803_s25 }
 0x336   : > { %s4138_s25 = smov %s1908_s9  ;;  %s4139_s26 = smov %s1811_s27 }
 0x337   : > { %s4140_s27 = smov %s4142_s5  ;;  %26 = sbr.rel (!%p24_p3) target bundleno = 29 (0x1d), region = 96 }
 0x33e   :  { %1558 = vsyncpa [#allocation7], 1 }
 0x33f   :  { %1560 = vsyncpa [#allocation7 + $0x1], 1 }

</bundles_post_ra>
